<compile_context>
chip_gen: v7x
topology: tpu7x:2x2x1
jax: 0.10.0
libtpu: 0.0.40
codegen_flags: <defaults>
</compile_context>

<pallas_src>
import numpy as np

import jax
import jax.numpy as jnp
from jax.experimental import pallas as pl
from jax.experimental.pallas import tpu as pltpu  # noqa: F401  (kept for TPU-specific tuning hooks)

F32 = jnp.float32
BN_EPS = 1e-5


# -----------------------------------------------------------------------------
# Fused whole-forward Pallas kernel (single invocation, everything in VMEM)
# -----------------------------------------------------------------------------
def randwire_forward_kernel(
    x_ref,                                    # [B*H, W*3]  input, lane-dense
    r12_ref, m1_ref, b1_ref,                  # conv1: row-select / lane-mix / bias
    m2_ref, b2_ref,                           # conv2 (row-select shared with conv1)
    s3_ref, g3_ref, d3_ref, p3_ref, c3_ref,   # RandWire stage 3
    s4_ref, g4_ref, d4_ref, p4_ref, c4_ref,   # RandWire stage 4
    pr_ref, pc_ref,                           # global average pool matrices
    wcls_ref, bcls_ref,                       # classifier 1x1 conv + BN (folded)
    wfc_ref, bfc_ref,                         # output Linear
    o_ref,                                    # [B, num_classes]
):
    def band_conv(act, rsel_ref, mix_ref, bias_row):
        # 3x3 conv (dense or depthwise; stride & zero-padding baked into the
        # selection matrices) as three row-gather + lane-mix MXU matmuls.
        acc = None
        for dy in range(3):                                  # unrolled at trace
            rows = jnp.dot(rsel_ref[dy], act, preferred_element_type=jnp.float32)
            term = jnp.dot(rows, mix_ref[dy], preferred_element_type=jnp.float32)
            acc = term if acc is None else acc + term
        return acc + bias_row

    # CIFAR_conv1: conv3x3(3->C) + BN + ReLU
    a = jnp.maximum(band_conv(x_ref[...], r12_ref, m1_ref, b1_ref[...]), 0.0)
    # CIFAR_conv2: conv3x3(C->C) + BN
    a = band_conv(a, r12_ref, m2_ref, b2_ref[...])

    # RandWire stages: ReLU -> depthwise 3x3 stride-2 -> pointwise 1x1 -> BN
    def stage(act, s_ref, g_ref, d_row, p_ref, c_row):
        dw = band_conv(jnp.maximum(act, 0.0), s_ref, g_ref, d_row)
        return jnp.dot(dw, p_ref[...], preferred_element_type=jnp.float32) + c_row

    a = stage(a, s3_ref, g3_ref, d3_ref[...], p3_ref, c3_ref[...])
    a = stage(a, s4_ref, g4_ref, d4_ref[...], p4_ref, c4_ref[...])

    # Global average pool, hoisted in front of the classifier:
    #   mean_HW(x @ Wcls * s + b) == (mean_HW(x) @ Wcls) * s + b
    # because the 1x1 conv + eval-BN is linear and spatially pointwise.
    pooled = jnp.dot(
        pr_ref[...],
        jnp.dot(a, pc_ref[...], preferred_element_type=jnp.float32),
        preferred_element_type=jnp.float32,
    )                                                         # [B, 4C]

    # CIFAR_classifier: 1x1 conv + BN (BN scale folded into wcls, bias in bcls)
    feat = jnp.dot(pooled, wcls_ref[...],
                   preferred_element_type=jnp.float32) + bcls_ref[...]   # [B, 1280]

    # Dropout(0.2) in eval mode == identity; output Linear(1280 -> num_classes)
    o_ref[...] = (jnp.dot(feat, wfc_ref[...], preferred_element_type=jnp.float32)
                  + bfc_ref[...]).astype(o_ref.dtype)


# -----------------------------------------------------------------------------
# Host wrapper
# -----------------------------------------------------------------------------
_PARAM_ORDER = ("r12", "m1", "b1", "m2", "b2",
                "s3", "g3", "d3", "p3", "c3",
                "s4", "g4", "d4", "p4", "c4",
                "pr", "pc", "wcls", "bcls", "wfc", "bfc")


def forward(x_nchw, params):
    B, _, H, W = x_nchw.shape
    # NCHW -> NHWC -> lane-dense [B*H, W*Cin] (Cin = 3)
    x = jnp.transpose(x_nchw, (0, 2, 3, 1)).astype(F32).reshape(B * H, W * 3)
    num_classes = params["bfc"].shape[1]
    return pl.pallas_call(
        randwire_forward_kernel,
        out_shape=jax.ShapeDtypeStruct((B, num_classes), F32),
    )(x, *[params[k] for k in _PARAM_ORDER])


# -----------------------------------------------------------------------------
# Parameter construction (deterministic, synthetic) + gather-matrix baking
# -----------------------------------------------------------------------------
def fold_bn(gamma, beta, conv_bias):
    """Fold conv bias + eval-mode BatchNorm (mean=0, var=1) into scale/bias."""
    inv = gamma / np.sqrt(1.0 + BN_EPS)
    return inv.astype(np.float32), (inv * conv_bias + beta).astype(np.float32)


def _row_select(B, Hin, Ho, stride):
    """[3, B*Ho, B*Hin]: output row (b,i) reads input row (b, stride*i+dy-1)."""
    m = np.zeros((3, B * Ho, B * Hin), np.float32)
    for dy in range(3):
        for b in range(B):
            for i in range(Ho):
                h = stride * i + dy - 1
                if 0 <= h < Hin:
                    m[dy, b * Ho + i, b * Hin + h] = 1.0
    return m


def _conv_lane_mix(w4d, scale, Win, Wo, stride):
    """[3, Win*Cin, Wo*Cout]: column gather fused with conv weight * BN scale."""
    _, _, cin, cout = w4d.shape
    ws = (w4d * scale[None, None, None, :]).astype(np.float32)
    m = np.zeros((3, Win * cin, Wo * cout), np.float32)
    for dy in range(3):
        for dx in range(3):
            for j in range(Wo):
                w = stride * j + dx - 1
                if 0 <= w < Win:
                    m[dy, w * cin:(w + 1) * cin, j * cout:(j + 1) * cout] += ws[dy, dx]
    return m


def _dw_lane_mix(dww, Win, Wo):
    """[3, Win*C, Wo*C]: stride-2 column gather fused with depthwise weights."""
    c = dww.shape[2]
    g = np.zeros((3, Win * c, Wo * c), np.float32)
    for dy in range(3):
        for dx in range(3):
            for j in range(Wo):
                w = 2 * j + dx - 1
                if 0 <= w < Win:
                    g[dy, w * c:(w + 1) * c, j * c:(j + 1) * c] += np.diag(dww[dy, dx])
    return g


def _pw_block(wpw, scale, Wo):
    """[Wo*Cin, Wo*Cout]: block-diagonal pointwise weight with BN scale folded."""
    cin, cout = wpw.shape
    ws = (wpw * scale[None, :]).astype(np.float32)
    p = np.zeros((Wo * cin, Wo * cout), np.float32)
    for j in range(Wo):
        p[j * cin:(j + 1) * cin, j * cout:(j + 1) * cout] = ws
    return p


def _tile_row(v, reps):
    return np.tile(np.asarray(v, np.float32), reps)[None, :]


def init_params(key, in_channels, out_channels, num_classes, B, H, W):
    del in_channels  # == out_channels in this configuration
    C = out_channels
    keys = iter(jax.random.split(key, 32))

    def nrm(shape, s=0.1):
        return np.asarray(s * jax.random.normal(next(keys), shape, dtype=F32))

    H2, W2 = H // 2, W // 2        # after RandWire stage 3
    H4, W4 = H2 // 2, W2 // 2      # after RandWire stage 4
    C4 = 4 * C

    p = {}
    # shared stride-1 row selectors for conv1 / conv2
    p["r12"] = _row_select(B, H, H, 1)

    # conv1: 3x3, 3 -> C, BN, ReLU
    w1 = nrm((3, 3, 3, C))
    s1, bb1 = fold_bn(nrm((C,)) + 1.0, nrm((C,)), nrm((C,)))
    p["m1"] = _conv_lane_mix(w1, s1, W, W, 1)
    p["b1"] = _tile_row(bb1, W)

    # conv2: 3x3, C -> C, BN
    w2 = nrm((3, 3, C, C))
    s2, bb2 = fold_bn(nrm((C,)) + 1.0, nrm((C,)), nrm((C,)))
    p["m2"] = _conv_lane_mix(w2, s2, W, W, 1)
    p["b2"] = _tile_row(bb2, W)

    # RandWire stages (stand-in single Unit each): ReLU -> dw3x3/2 -> 1x1 -> BN
    def stage(cin, cout, Hin, Win):
        Ho, Wo = Hin // 2, Win // 2
        dww, dwb = nrm((3, 3, cin)), nrm((cin,))
        pww, pwb = nrm((cin, cout)), nrm((cout,))
        sc, bi = fold_bn(nrm((cout,)) + 1.0, nrm((cout,)), pwb)
        return dict(s=_row_select(B, Hin, Ho, 2),
                    g=_dw_lane_mix(dww, Win, Wo),
                    d=_tile_row(dwb, Wo),
                    p=_pw_block(pww, sc, Wo),
                    c=_tile_row(bi, Wo))

    for k, v in stage(C, 2 * C, H, W).items():
        p[k + "3"] = v
    for k, v in stage(2 * C, 4 * C, H2, W2).items():
        p[k + "4"] = v

    # global average pool matrices (row mean over H4, lane-group mean over W4)
    pr = np.zeros((B, B * H4), np.float32)
    for b in range(B):
        pr[b, b * H4:(b + 1) * H4] = 1.0 / H4
    pc = np.zeros((W4 * C4, C4), np.float32)
    for j in range(W4):
        pc[j * C4:(j + 1) * C4, :] = np.eye(C4, dtype=np.float32) / W4
    p["pr"], p["pc"] = pr, pc

    # classifier: 1x1 conv 4C -> 1280, BN folded into weight/bias
    wc = nrm((C4, 1280), 0.05)
    sc, bic = fold_bn(nrm((1280,)) + 1.0, nrm((1280,)), nrm((1280,)))
    p["wcls"] = wc * sc[None, :]
    p["bcls"] = bic[None, :]

    # output head: Dropout(eval) + Linear(1280 -> num_classes)
    p["wfc"] = nrm((1280, num_classes), 0.02)
    p["bfc"] = nrm((num_classes,))[None, :]

    return {k: jnp.asarray(v, F32) for k, v in p.items()}


# -----------------------------------------------------------------------------
if __name__ == "__main__":
    # Model(node_num=4, p=0.75, k=4, m=5, in_channels=8, out_channels=8,
    #       graph_mode='WS', model_mode='CIFAR10', dataset_mode='CIFAR10',
    #       is_train=False)
    in_channels = out_channels = 8
    num_classes = 10                       # CIFAR10
    B, H, W = 2, 16, 16

    key = jax.random.PRNGKey(0)
    kx, kp = jax.random.split(key)
    x = jax.random.normal(kx, (B, 3, H, W), dtype=F32)   # PyTorch-style NCHW input
    params = init_params(kp, in_channels, out_channels, num_classes, B, H, W)

    fwd = jax.jit(forward)
    out = jax.block_until_ready(fwd(x, params))
    assert out.shape == (B, num_classes), out.shape
    print("KERNEL_OK")
</pallas_src>

<mosaic_0001>
module attributes {stable_mosaic.version = 11 : i64} {
  func.func @randwire_forward_kernel(%arg0: memref<32x48xf32, #tpu.memory_space<vmem>>, %arg1: memref<3x32x32xf32, #tpu.memory_space<vmem>>, %arg2: memref<3x48x128xf32, #tpu.memory_space<vmem>>, %arg3: memref<1x128xf32, #tpu.memory_space<vmem>>, %arg4: memref<3x128x128xf32, #tpu.memory_space<vmem>>, %arg5: memref<1x128xf32, #tpu.memory_space<vmem>>, %arg6: memref<3x16x32xf32, #tpu.memory_space<vmem>>, %arg7: memref<3x128x64xf32, #tpu.memory_space<vmem>>, %arg8: memref<1x64xf32, #tpu.memory_space<vmem>>, %arg9: memref<64x128xf32, #tpu.memory_space<vmem>>, %arg10: memref<1x128xf32, #tpu.memory_space<vmem>>, %arg11: memref<3x8x16xf32, #tpu.memory_space<vmem>>, %arg12: memref<3x128x64xf32, #tpu.memory_space<vmem>>, %arg13: memref<1x64xf32, #tpu.memory_space<vmem>>, %arg14: memref<64x128xf32, #tpu.memory_space<vmem>>, %arg15: memref<1x128xf32, #tpu.memory_space<vmem>>, %arg16: memref<2x8xf32, #tpu.memory_space<vmem>>, %arg17: memref<128x32xf32, #tpu.memory_space<vmem>>, %arg18: memref<32x1280xf32, #tpu.memory_space<vmem>>, %arg19: memref<1x1280xf32, #tpu.memory_space<vmem>>, %arg20: memref<1280x10xf32, #tpu.memory_space<vmem>>, %arg21: memref<1x10xf32, #tpu.memory_space<vmem>>, %arg22: memref<2x10xf32, #tpu.memory_space<vmem>>) attributes {dimension_semantics = [], scalar_prefetch = 0 : i64, scratch_operands = 0 : i64, tpu.core_type = #tpu.core_type<tc>} {
    %c0 = arith.constant 0 : index
    %c0_0 = arith.constant 0 : index
    %0 = vector.load %arg0[%c0, %c0_0] : memref<32x48xf32, #tpu.memory_space<vmem>>, vector<32x48xf32>
    %c0_1 = arith.constant 0 : index
    %c0_2 = arith.constant 0 : index
    %1 = vector.load %arg3[%c0_1, %c0_2] : memref<1x128xf32, #tpu.memory_space<vmem>>, vector<1x128xf32>
    %c0_3 = arith.constant 0 : index
    %c0_4 = arith.constant 0 : index
    %c0_5 = arith.constant 0 : index
    %2 = vector.load %arg1[%c0_3, %c0_4, %c0_5] : memref<3x32x32xf32, #tpu.memory_space<vmem>>, vector<1x32x32xf32>
    %3 = vector.shape_cast %2 : vector<1x32x32xf32> to vector<32x32xf32>
    %cst = arith.constant dense<0.000000e+00> : vector<32x48xf32>
    %4 = tpu.matmul %3, %0, %cst {dimension_numbers = #tpu.dot_dimension_numbers<[1], [0], [0], [1], [0, 0, 1, 1], [], []>} : vector<32x32xf32>, vector<32x48xf32>, vector<32x48xf32> -> vector<32x48xf32>
    %c0_6 = arith.constant 0 : index
    %c0_7 = arith.constant 0 : index
    %c0_8 = arith.constant 0 : index
    %5 = vector.load %arg2[%c0_6, %c0_7, %c0_8] : memref<3x48x128xf32, #tpu.memory_space<vmem>>, vector<1x48x128xf32>
    %6 = vector.shape_cast %5 : vector<1x48x128xf32> to vector<48x128xf32>
    %cst_9 = arith.constant dense<0.000000e+00> : vector<32x128xf32>
    %7 = tpu.matmul %4, %6, %cst_9 {dimension_numbers = #tpu.dot_dimension_numbers<[1], [0], [0], [1], [0, 0, 1, 1], [], []>} : vector<32x48xf32>, vector<48x128xf32>, vector<32x128xf32> -> vector<32x128xf32>
    %c1 = arith.constant 1 : index
    %c0_10 = arith.constant 0 : index
    %c0_11 = arith.constant 0 : index
    %8 = vector.load %arg1[%c1, %c0_10, %c0_11] : memref<3x32x32xf32, #tpu.memory_space<vmem>>, vector<1x32x32xf32>
    %9 = vector.shape_cast %8 : vector<1x32x32xf32> to vector<32x32xf32>
    %cst_12 = arith.constant dense<0.000000e+00> : vector<32x48xf32>
    %10 = tpu.matmul %9, %0, %cst_12 {dimension_numbers = #tpu.dot_dimension_numbers<[1], [0], [0], [1], [0, 0, 1, 1], [], []>} : vector<32x32xf32>, vector<32x48xf32>, vector<32x48xf32> -> vector<32x48xf32>
    %c1_13 = arith.constant 1 : index
    %c0_14 = arith.constant 0 : index
    %c0_15 = arith.constant 0 : index
    %11 = vector.load %arg2[%c1_13, %c0_14, %c0_15] : memref<3x48x128xf32, #tpu.memory_space<vmem>>, vector<1x48x128xf32>
    %12 = vector.shape_cast %11 : vector<1x48x128xf32> to vector<48x128xf32>
    %cst_16 = arith.constant dense<0.000000e+00> : vector<32x128xf32>
    %13 = tpu.matmul %10, %12, %cst_16 {dimension_numbers = #tpu.dot_dimension_numbers<[1], [0], [0], [1], [0, 0, 1, 1], [], []>} : vector<32x48xf32>, vector<48x128xf32>, vector<32x128xf32> -> vector<32x128xf32>
    %14 = arith.addf %7, %13 : vector<32x128xf32>
    %c2 = arith.constant 2 : index
    %c0_17 = arith.constant 0 : index
    %c0_18 = arith.constant 0 : index
    %15 = vector.load %arg1[%c2, %c0_17, %c0_18] : memref<3x32x32xf32, #tpu.memory_space<vmem>>, vector<1x32x32xf32>
    %16 = vector.shape_cast %15 : vector<1x32x32xf32> to vector<32x32xf32>
    %cst_19 = arith.constant dense<0.000000e+00> : vector<32x48xf32>
    %17 = tpu.matmul %16, %0, %cst_19 {dimension_numbers = #tpu.dot_dimension_numbers<[1], [0], [0], [1], [0, 0, 1, 1], [], []>} : vector<32x32xf32>, vector<32x48xf32>, vector<32x48xf32> -> vector<32x48xf32>
    %c2_20 = arith.constant 2 : index
    %c0_21 = arith.constant 0 : index
    %c0_22 = arith.constant 0 : index
    %18 = vector.load %arg2[%c2_20, %c0_21, %c0_22] : memref<3x48x128xf32, #tpu.memory_space<vmem>>, vector<1x48x128xf32>
    %19 = vector.shape_cast %18 : vector<1x48x128xf32> to vector<48x128xf32>
    %cst_23 = arith.constant dense<0.000000e+00> : vector<32x128xf32>
    %20 = tpu.matmul %17, %19, %cst_23 {dimension_numbers = #tpu.dot_dimension_numbers<[1], [0], [0], [1], [0, 0, 1, 1], [], []>} : vector<32x48xf32>, vector<48x128xf32>, vector<32x128xf32> -> vector<32x128xf32>
    %21 = arith.addf %14, %20 : vector<32x128xf32>
    %22 = vector.broadcast %1 : vector<1x128xf32> to vector<32x128xf32>
    %23 = arith.addf %21, %22 : vector<32x128xf32>
    %cst_24 = arith.constant 0.000000e+00 : f32
    %24 = vector.broadcast %cst_24 : f32 to vector<32x128xf32>
    %25 = arith.maximumf %23, %24 : vector<32x128xf32>
    %c0_25 = arith.constant 0 : index
    %c0_26 = arith.constant 0 : index
    %26 = vector.load %arg5[%c0_25, %c0_26] : memref<1x128xf32, #tpu.memory_space<vmem>>, vector<1x128xf32>
    %c0_27 = arith.constant 0 : index
    %c0_28 = arith.constant 0 : index
    %c0_29 = arith.constant 0 : index
    %27 = vector.load %arg1[%c0_27, %c0_28, %c0_29] : memref<3x32x32xf32, #tpu.memory_space<vmem>>, vector<1x32x32xf32>
    %28 = vector.shape_cast %27 : vector<1x32x32xf32> to vector<32x32xf32>
    %cst_30 = arith.constant dense<0.000000e+00> : vector<32x128xf32>
    %29 = tpu.matmul %28, %25, %cst_30 {dimension_numbers = #tpu.dot_dimension_numbers<[1], [0], [0], [1], [0, 0, 1, 1], [], []>} : vector<32x32xf32>, vector<32x128xf32>, vector<32x128xf32> -> vector<32x128xf32>
    %c0_31 = arith.constant 0 : index
    %c0_32 = arith.constant 0 : index
    %c0_33 = arith.constant 0 : index
    %30 = vector.load %arg4[%c0_31, %c0_32, %c0_33] : memref<3x128x128xf32, #tpu.memory_space<vmem>>, vector<1x128x128xf32>
    %31 = vector.shape_cast %30 : vector<1x128x128xf32> to vector<128x128xf32>
    %cst_34 = arith.constant dense<0.000000e+00> : vector<32x128xf32>
    %32 = tpu.matmul %29, %31, %cst_34 {dimension_numbers = #tpu.dot_dimension_numbers<[1], [0], [0], [1], [0, 0, 1, 1], [], []>} : vector<32x128xf32>, vector<128x128xf32>, vector<32x128xf32> -> vector<32x128xf32>
    %c1_35 = arith.constant 1 : index
    %c0_36 = arith.constant 0 : index
    %c0_37 = arith.constant 0 : index
    %33 = vector.load %arg1[%c1_35, %c0_36, %c0_37] : memref<3x32x32xf32, #tpu.memory_space<vmem>>, vector<1x32x32xf32>
    %34 = vector.shape_cast %33 : vector<1x32x32xf32> to vector<32x32xf32>
    %cst_38 = arith.constant dense<0.000000e+00> : vector<32x128xf32>
    %35 = tpu.matmul %34, %25, %cst_38 {dimension_numbers = #tpu.dot_dimension_numbers<[1], [0], [0], [1], [0, 0, 1, 1], [], []>} : vector<32x32xf32>, vector<32x128xf32>, vector<32x128xf32> -> vector<32x128xf32>
    %c1_39 = arith.constant 1 : index
    %c0_40 = arith.constant 0 : index
    %c0_41 = arith.constant 0 : index
    %36 = vector.load %arg4[%c1_39, %c0_40, %c0_41] : memref<3x128x128xf32, #tpu.memory_space<vmem>>, vector<1x128x128xf32>
    %37 = vector.shape_cast %36 : vector<1x128x128xf32> to vector<128x128xf32>
    %cst_42 = arith.constant dense<0.000000e+00> : vector<32x128xf32>
    %38 = tpu.matmul %35, %37, %cst_42 {dimension_numbers = #tpu.dot_dimension_numbers<[1], [0], [0], [1], [0, 0, 1, 1], [], []>} : vector<32x128xf32>, vector<128x128xf32>, vector<32x128xf32> -> vector<32x128xf32>
    %39 = arith.addf %32, %38 : vector<32x128xf32>
    %c2_43 = arith.constant 2 : index
    %c0_44 = arith.constant 0 : index
    %c0_45 = arith.constant 0 : index
    %40 = vector.load %arg1[%c2_43, %c0_44, %c0_45] : memref<3x32x32xf32, #tpu.memory_space<vmem>>, vector<1x32x32xf32>
    %41 = vector.shape_cast %40 : vector<1x32x32xf32> to vector<32x32xf32>
    %cst_46 = arith.constant dense<0.000000e+00> : vector<32x128xf32>
    %42 = tpu.matmul %41, %25, %cst_46 {dimension_numbers = #tpu.dot_dimension_numbers<[1], [0], [0], [1], [0, 0, 1, 1], [], []>} : vector<32x32xf32>, vector<32x128xf32>, vector<32x128xf32> -> vector<32x128xf32>
    %c2_47 = arith.constant 2 : index
    %c0_48 = arith.constant 0 : index
    %c0_49 = arith.constant 0 : index
    %43 = vector.load %arg4[%c2_47, %c0_48, %c0_49] : memref<3x128x128xf32, #tpu.memory_space<vmem>>, vector<1x128x128xf32>
    %44 = vector.shape_cast %43 : vector<1x128x128xf32> to vector<128x128xf32>
    %cst_50 = arith.constant dense<0.000000e+00> : vector<32x128xf32>
    %45 = tpu.matmul %42, %44, %cst_50 {dimension_numbers = #tpu.dot_dimension_numbers<[1], [0], [0], [1], [0, 0, 1, 1], [], []>} : vector<32x128xf32>, vector<128x128xf32>, vector<32x128xf32> -> vector<32x128xf32>
    %46 = arith.addf %39, %45 : vector<32x128xf32>
    %47 = vector.broadcast %26 : vector<1x128xf32> to vector<32x128xf32>
    %48 = arith.addf %46, %47 : vector<32x128xf32>
    %c0_51 = arith.constant 0 : index
    %c0_52 = arith.constant 0 : index
    %49 = vector.load %arg8[%c0_51, %c0_52] : memref<1x64xf32, #tpu.memory_space<vmem>>, vector<1x64xf32>
    %c0_53 = arith.constant 0 : index
    %c0_54 = arith.constant 0 : index
    %50 = vector.load %arg10[%c0_53, %c0_54] : memref<1x128xf32, #tpu.memory_space<vmem>>, vector<1x128xf32>
    %cst_55 = arith.constant 0.000000e+00 : f32
    %51 = vector.broadcast %cst_55 : f32 to vector<32x128xf32>
    %52 = arith.maximumf %48, %51 : vector<32x128xf32>
    %c0_56 = arith.constant 0 : index
    %c0_57 = arith.constant 0 : index
    %c0_58 = arith.constant 0 : index
    %53 = vector.load %arg6[%c0_56, %c0_57, %c0_58] : memref<3x16x32xf32, #tpu.memory_space<vmem>>, vector<1x16x32xf32>
    %54 = vector.shape_cast %53 : vector<1x16x32xf32> to vector<16x32xf32>
    %cst_59 = arith.constant dense<0.000000e+00> : vector<16x128xf32>
    %55 = tpu.matmul %54, %52, %cst_59 {dimension_numbers = #tpu.dot_dimension_numbers<[1], [0], [0], [1], [0, 0, 1, 1], [], []>} : vector<16x32xf32>, vector<32x128xf32>, vector<16x128xf32> -> vector<16x128xf32>
    %c0_60 = arith.constant 0 : index
    %c0_61 = arith.constant 0 : index
    %c0_62 = arith.constant 0 : index
    %56 = vector.load %arg7[%c0_60, %c0_61, %c0_62] : memref<3x128x64xf32, #tpu.memory_space<vmem>>, vector<1x128x64xf32>
    %57 = vector.shape_cast %56 : vector<1x128x64xf32> to vector<128x64xf32>
    %cst_63 = arith.constant dense<0.000000e+00> : vector<16x64xf32>
    %58 = tpu.matmul %55, %57, %cst_63 {dimension_numbers = #tpu.dot_dimension_numbers<[1], [0], [0], [1], [0, 0, 1, 1], [], []>} : vector<16x128xf32>, vector<128x64xf32>, vector<16x64xf32> -> vector<16x64xf32>
    %c1_64 = arith.constant 1 : index
    %c0_65 = arith.constant 0 : index
    %c0_66 = arith.constant 0 : index
    %59 = vector.load %arg6[%c1_64, %c0_65, %c0_66] : memref<3x16x32xf32, #tpu.memory_space<vmem>>, vector<1x16x32xf32>
    %60 = vector.shape_cast %59 : vector<1x16x32xf32> to vector<16x32xf32>
    %cst_67 = arith.constant dense<0.000000e+00> : vector<16x128xf32>
    %61 = tpu.matmul %60, %52, %cst_67 {dimension_numbers = #tpu.dot_dimension_numbers<[1], [0], [0], [1], [0, 0, 1, 1], [], []>} : vector<16x32xf32>, vector<32x128xf32>, vector<16x128xf32> -> vector<16x128xf32>
    %c1_68 = arith.constant 1 : index
    %c0_69 = arith.constant 0 : index
    %c0_70 = arith.constant 0 : index
    %62 = vector.load %arg7[%c1_68, %c0_69, %c0_70] : memref<3x128x64xf32, #tpu.memory_space<vmem>>, vector<1x128x64xf32>
    %63 = vector.shape_cast %62 : vector<1x128x64xf32> to vector<128x64xf32>
    %cst_71 = arith.constant dense<0.000000e+00> : vector<16x64xf32>
    %64 = tpu.matmul %61, %63, %cst_71 {dimension_numbers = #tpu.dot_dimension_numbers<[1], [0], [0], [1], [0, 0, 1, 1], [], []>} : vector<16x128xf32>, vector<128x64xf32>, vector<16x64xf32> -> vector<16x64xf32>
    %65 = arith.addf %58, %64 : vector<16x64xf32>
    %c2_72 = arith.constant 2 : index
    %c0_73 = arith.constant 0 : index
    %c0_74 = arith.constant 0 : index
    %66 = vector.load %arg6[%c2_72, %c0_73, %c0_74] : memref<3x16x32xf32, #tpu.memory_space<vmem>>, vector<1x16x32xf32>
    %67 = vector.shape_cast %66 : vector<1x16x32xf32> to vector<16x32xf32>
    %cst_75 = arith.constant dense<0.000000e+00> : vector<16x128xf32>
    %68 = tpu.matmul %67, %52, %cst_75 {dimension_numbers = #tpu.dot_dimension_numbers<[1], [0], [0], [1], [0, 0, 1, 1], [], []>} : vector<16x32xf32>, vector<32x128xf32>, vector<16x128xf32> -> vector<16x128xf32>
    %c2_76 = arith.constant 2 : index
    %c0_77 = arith.constant 0 : index
    %c0_78 = arith.constant 0 : index
    %69 = vector.load %arg7[%c2_76, %c0_77, %c0_78] : memref<3x128x64xf32, #tpu.memory_space<vmem>>, vector<1x128x64xf32>
    %70 = vector.shape_cast %69 : vector<1x128x64xf32> to vector<128x64xf32>
    %cst_79 = arith.constant dense<0.000000e+00> : vector<16x64xf32>
    %71 = tpu.matmul %68, %70, %cst_79 {dimension_numbers = #tpu.dot_dimension_numbers<[1], [0], [0], [1], [0, 0, 1, 1], [], []>} : vector<16x128xf32>, vector<128x64xf32>, vector<16x64xf32> -> vector<16x64xf32>
    %72 = arith.addf %65, %71 : vector<16x64xf32>
    %73 = vector.broadcast %49 : vector<1x64xf32> to vector<16x64xf32>
    %74 = arith.addf %72, %73 : vector<16x64xf32>
    %c0_80 = arith.constant 0 : index
    %c0_81 = arith.constant 0 : index
    %75 = vector.load %arg9[%c0_80, %c0_81] : memref<64x128xf32, #tpu.memory_space<vmem>>, vector<64x128xf32>
    %cst_82 = arith.constant dense<0.000000e+00> : vector<16x128xf32>
    %76 = tpu.matmul %74, %75, %cst_82 {dimension_numbers = #tpu.dot_dimension_numbers<[1], [0], [0], [1], [0, 0, 1, 1], [], []>} : vector<16x64xf32>, vector<64x128xf32>, vector<16x128xf32> -> vector<16x128xf32>
    %77 = vector.broadcast %50 : vector<1x128xf32> to vector<16x128xf32>
    %78 = arith.addf %76, %77 : vector<16x128xf32>
    %c0_83 = arith.constant 0 : index
    %c0_84 = arith.constant 0 : index
    %79 = vector.load %arg13[%c0_83, %c0_84] : memref<1x64xf32, #tpu.memory_space<vmem>>, vector<1x64xf32>
    %c0_85 = arith.constant 0 : index
    %c0_86 = arith.constant 0 : index
    %80 = vector.load %arg15[%c0_85, %c0_86] : memref<1x128xf32, #tpu.memory_space<vmem>>, vector<1x128xf32>
    %cst_87 = arith.constant 0.000000e+00 : f32
    %81 = vector.broadcast %cst_87 : f32 to vector<16x128xf32>
    %82 = arith.maximumf %78, %81 : vector<16x128xf32>
    %c0_88 = arith.constant 0 : index
    %c0_89 = arith.constant 0 : index
    %c0_90 = arith.constant 0 : index
    %83 = vector.load %arg11[%c0_88, %c0_89, %c0_90] : memref<3x8x16xf32, #tpu.memory_space<vmem>>, vector<1x8x16xf32>
    %84 = vector.shape_cast %83 : vector<1x8x16xf32> to vector<8x16xf32>
    %cst_91 = arith.constant dense<0.000000e+00> : vector<8x128xf32>
    %85 = tpu.matmul %84, %82, %cst_91 {dimension_numbers = #tpu.dot_dimension_numbers<[1], [0], [0], [1], [0, 0, 1, 1], [], []>} : vector<8x16xf32>, vector<16x128xf32>, vector<8x128xf32> -> vector<8x128xf32>
    %c0_92 = arith.constant 0 : index
    %c0_93 = arith.constant 0 : index
    %c0_94 = arith.constant 0 : index
    %86 = vector.load %arg12[%c0_92, %c0_93, %c0_94] : memref<3x128x64xf32, #tpu.memory_space<vmem>>, vector<1x128x64xf32>
    %87 = vector.shape_cast %86 : vector<1x128x64xf32> to vector<128x64xf32>
    %cst_95 = arith.constant dense<0.000000e+00> : vector<8x64xf32>
    %88 = tpu.matmul %85, %87, %cst_95 {dimension_numbers = #tpu.dot_dimension_numbers<[1], [0], [0], [1], [0, 0, 1, 1], [], []>} : vector<8x128xf32>, vector<128x64xf32>, vector<8x64xf32> -> vector<8x64xf32>
    %c1_96 = arith.constant 1 : index
    %c0_97 = arith.constant 0 : index
    %c0_98 = arith.constant 0 : index
    %89 = vector.load %arg11[%c1_96, %c0_97, %c0_98] : memref<3x8x16xf32, #tpu.memory_space<vmem>>, vector<1x8x16xf32>
    %90 = vector.shape_cast %89 : vector<1x8x16xf32> to vector<8x16xf32>
    %cst_99 = arith.constant dense<0.000000e+00> : vector<8x128xf32>
    %91 = tpu.matmul %90, %82, %cst_99 {dimension_numbers = #tpu.dot_dimension_numbers<[1], [0], [0], [1], [0, 0, 1, 1], [], []>} : vector<8x16xf32>, vector<16x128xf32>, vector<8x128xf32> -> vector<8x128xf32>
    %c1_100 = arith.constant 1 : index
    %c0_101 = arith.constant 0 : index
    %c0_102 = arith.constant 0 : index
    %92 = vector.load %arg12[%c1_100, %c0_101, %c0_102] : memref<3x128x64xf32, #tpu.memory_space<vmem>>, vector<1x128x64xf32>
    %93 = vector.shape_cast %92 : vector<1x128x64xf32> to vector<128x64xf32>
    %cst_103 = arith.constant dense<0.000000e+00> : vector<8x64xf32>
    %94 = tpu.matmul %91, %93, %cst_103 {dimension_numbers = #tpu.dot_dimension_numbers<[1], [0], [0], [1], [0, 0, 1, 1], [], []>} : vector<8x128xf32>, vector<128x64xf32>, vector<8x64xf32> -> vector<8x64xf32>
    %95 = arith.addf %88, %94 : vector<8x64xf32>
    %c2_104 = arith.constant 2 : index
    %c0_105 = arith.constant 0 : index
    %c0_106 = arith.constant 0 : index
    %96 = vector.load %arg11[%c2_104, %c0_105, %c0_106] : memref<3x8x16xf32, #tpu.memory_space<vmem>>, vector<1x8x16xf32>
    %97 = vector.shape_cast %96 : vector<1x8x16xf32> to vector<8x16xf32>
    %cst_107 = arith.constant dense<0.000000e+00> : vector<8x128xf32>
    %98 = tpu.matmul %97, %82, %cst_107 {dimension_numbers = #tpu.dot_dimension_numbers<[1], [0], [0], [1], [0, 0, 1, 1], [], []>} : vector<8x16xf32>, vector<16x128xf32>, vector<8x128xf32> -> vector<8x128xf32>
    %c2_108 = arith.constant 2 : index
    %c0_109 = arith.constant 0 : index
    %c0_110 = arith.constant 0 : index
    %99 = vector.load %arg12[%c2_108, %c0_109, %c0_110] : memref<3x128x64xf32, #tpu.memory_space<vmem>>, vector<1x128x64xf32>
    %100 = vector.shape_cast %99 : vector<1x128x64xf32> to vector<128x64xf32>
    %cst_111 = arith.constant dense<0.000000e+00> : vector<8x64xf32>
    %101 = tpu.matmul %98, %100, %cst_111 {dimension_numbers = #tpu.dot_dimension_numbers<[1], [0], [0], [1], [0, 0, 1, 1], [], []>} : vector<8x128xf32>, vector<128x64xf32>, vector<8x64xf32> -> vector<8x64xf32>
    %102 = arith.addf %95, %101 : vector<8x64xf32>
    %103 = vector.broadcast %79 : vector<1x64xf32> to vector<8x64xf32>
    %104 = arith.addf %102, %103 : vector<8x64xf32>
    %c0_112 = arith.constant 0 : index
    %c0_113 = arith.constant 0 : index
    %105 = vector.load %arg14[%c0_112, %c0_113] : memref<64x128xf32, #tpu.memory_space<vmem>>, vector<64x128xf32>
    %cst_114 = arith.constant dense<0.000000e+00> : vector<8x128xf32>
    %106 = tpu.matmul %104, %105, %cst_114 {dimension_numbers = #tpu.dot_dimension_numbers<[1], [0], [0], [1], [0, 0, 1, 1], [], []>} : vector<8x64xf32>, vector<64x128xf32>, vector<8x128xf32> -> vector<8x128xf32>
    %107 = vector.broadcast %80 : vector<1x128xf32> to vector<8x128xf32>
    %108 = arith.addf %106, %107 : vector<8x128xf32>
    %c0_115 = arith.constant 0 : index
    %c0_116 = arith.constant 0 : index
    %109 = vector.load %arg16[%c0_115, %c0_116] : memref<2x8xf32, #tpu.memory_space<vmem>>, vector<2x8xf32>
    %c0_117 = arith.constant 0 : index
    %c0_118 = arith.constant 0 : index
    %110 = vector.load %arg17[%c0_117, %c0_118] : memref<128x32xf32, #tpu.memory_space<vmem>>, vector<128x32xf32>
    %cst_119 = arith.constant dense<0.000000e+00> : vector<8x32xf32>
    %111 = tpu.matmul %108, %110, %cst_119 {dimension_numbers = #tpu.dot_dimension_numbers<[1], [0], [0], [1], [0, 0, 1, 1], [], []>} : vector<8x128xf32>, vector<128x32xf32>, vector<8x32xf32> -> vector<8x32xf32>
    %cst_120 = arith.constant dense<0.000000e+00> : vector<2x32xf32>
    %112 = tpu.matmul %109, %111, %cst_120 {dimension_numbers = #tpu.dot_dimension_numbers<[1], [0], [0], [1], [0, 0, 1, 1], [], []>} : vector<2x8xf32>, vector<8x32xf32>, vector<2x32xf32> -> vector<2x32xf32>
    %c0_121 = arith.constant 0 : index
    %c0_122 = arith.constant 0 : index
    %113 = vector.load %arg18[%c0_121, %c0_122] : memref<32x1280xf32, #tpu.memory_space<vmem>>, vector<32x1280xf32>
    %cst_123 = arith.constant dense<0.000000e+00> : vector<2x1280xf32>
    %114 = tpu.matmul %112, %113, %cst_123 {dimension_numbers = #tpu.dot_dimension_numbers<[1], [0], [0], [1], [0, 0, 1, 1], [], []>} : vector<2x32xf32>, vector<32x1280xf32>, vector<2x1280xf32> -> vector<2x1280xf32>
    %c0_124 = arith.constant 0 : index
    %c0_125 = arith.constant 0 : index
    %115 = vector.load %arg19[%c0_124, %c0_125] : memref<1x1280xf32, #tpu.memory_space<vmem>>, vector<1x1280xf32>
    %116 = vector.broadcast %115 : vector<1x1280xf32> to vector<2x1280xf32>
    %117 = arith.addf %114, %116 : vector<2x1280xf32>
    %c0_126 = arith.constant 0 : index
    %c0_127 = arith.constant 0 : index
    %118 = vector.load %arg20[%c0_126, %c0_127] : memref<1280x10xf32, #tpu.memory_space<vmem>>, vector<1280x10xf32>
    %cst_128 = arith.constant dense<0.000000e+00> : vector<2x10xf32>
    %119 = tpu.matmul %117, %118, %cst_128 {dimension_numbers = #tpu.dot_dimension_numbers<[1], [0], [0], [1], [0, 0, 1, 1], [], []>} : vector<2x1280xf32>, vector<1280x10xf32>, vector<2x10xf32> -> vector<2x10xf32>
    %c0_129 = arith.constant 0 : index
    %c0_130 = arith.constant 0 : index
    %120 = vector.load %arg21[%c0_129, %c0_130] : memref<1x10xf32, #tpu.memory_space<vmem>>, vector<1x10xf32>
    %121 = vector.broadcast %120 : vector<1x10xf32> to vector<2x10xf32>
    %122 = arith.addf %119, %121 : vector<2x10xf32>
    %c0_131 = arith.constant 0 : index
    %c0_132 = arith.constant 0 : index
    %123 = vector.load %arg22[%c0_131, %c0_132] : memref<2x10xf32, #tpu.memory_space<vmem>>, vector<2x10xf32>
    tpu.vector_store %arg22[%c0_131, %c0_132], %122 {strides = array<i32>} : memref<2x10xf32, #tpu.memory_space<vmem>>, vector<2x10xf32>,
    return
  }
}

</mosaic_0001>

<bundles_post_ra>
// kernel: forward.1
= control target key start
LH: loop header
LB: loop body
LE: loop exit
PB: predicated region body
PF: predicated region fallthrough
CT: control target
= control target key end

     0   :  { %s7261_s0 = inlined_call_operand.vmem [shape: f32[32,48], index: 0, kind: input, shape index: {}]   ;;  %s7262_s1 = inlined_call_operand.vmem [shape: f32[3,32,32], index: 1, kind: input, shape index: {}]   ;;  %s7263_s2 = inlined_call_operand.vmem [shape: f32[3,48,128], index: 2, kind: input, shape index: {}]   ;;  %s7264_s3 = inlined_call_operand.vmem [shape: f32[1,128], index: 3, kind: input, shape index: {}]   ;;  %s7265_s4 = inlined_call_operand.vmem [shape: f32[3,128,128], index: 4, kind: input, shape index: {}]   ;;  %s7266_s5 = inlined_call_operand.vmem [shape: f32[1,128], index: 5, kind: input, shape index: {}]   ;;  %s7267_s6 = inlined_call_operand.vmem [shape: f32[3,16,32], index: 6, kind: input, shape index: {}]   ;;  %s7268_s7 = inlined_call_operand.vmem [shape: f32[3,128,64], index: 7, kind: input, shape index: {}]   ;;  %s7269_s8 = inlined_call_operand.vmem [shape: f32[1,64], index: 8, kind: input, shape index: {}]   ;;  %s7270_s9 = inlined_call_operand.vmem [shape: f32[64,128], index: 9, kind: input, shape index: {}]   ;;  %s7271_s10 = inlined_call_operand.vmem [shape: f32[1,128], index: 10, kind: input, shape index: {}]   ;;  %s7272_s11 = inlined_call_operand.vmem [shape: f32[3,8,16], index: 11, kind: input, shape index: {}]   ;;  %s7273_s12 = inlined_call_operand.vmem [shape: f32[3,128,64], index: 12, kind: input, shape index: {}]   ;;  %s7274_s13 = inlined_call_operand.vmem [shape: f32[1,64], index: 13, kind: input, shape index: {}]   ;;  %s7275_s14 = inlined_call_operand.vmem [shape: f32[64,128], index: 14, kind: input, shape index: {}]   ;;  %s7276_s15 = inlined_call_operand.vmem [shape: f32[1,128], index: 15, kind: input, shape index: {}]   ;;  %s7277_s16 = inlined_call_operand.vmem [shape: f32[2,8], index: 16, kind: input, shape index: {}]   ;;  %s7278_s17 = inlined_call_operand.vmem [shape: f32[128,32], index: 17, kind: input, shape index: {}]   ;;  %s7279_s18 = inlined_call_operand.vmem [shape: f32[32,1280], index: 18, kind: input, shape index: {}]   ;;  %s7280_s19 = inlined_call_operand.vmem [shape: f32[1,1280], index: 19, kind: input, shape index: {}]   ;;  %s7281_s20 = inlined_call_operand.vmem [shape: f32[1280,10], index: 20, kind: input, shape index: {}]   ;;  %s7282_s21 = inlined_call_operand.vmem [shape: f32[1,10], index: 21, kind: input, shape index: {}]   ;;  %s7283_s22 = inlined_call_operand.hbm [shape: f32[2,10], index: 22, kind: output, shape index: {}]  }
   0x1   :  { %7289 = sst [smem:[#allocation5_spill]] %s7261_s0 }
   0x2   :  { %7290 = sst [smem:[#allocation6_spill]] %s7262_s1 }
   0x3   :  { %7291 = sst [smem:[#allocation7_spill]] %s7263_s2 }
   0x4   :  { %7292 = sst [smem:[#allocation8_spill]] %s7264_s3 }
   0x5   :  { %7293 = sst [smem:[#allocation9_spill]] %s7265_s4 }
   0x6   :  { %7294 = sst [smem:[#allocation10_spill]] %s7266_s5 }
   0x7   :  { %7295 = sst [smem:[#allocation11_spill]] %s7267_s6 }
   0x8   :  { %s7296_s29 = sld [smem:[#allocation5_spill]]  ;;  %vm81_vm0 = vcmask 261120   ;;  %s7297_s25 = sld [smem:[#allocation6_spill]] }
   0x9   :  { %s7298_s27 = sld [smem:[#allocation7_spill]] }
   0xe   :  { %v72_v0 = vld [vmem:[%s7296_s29] sm:$0xff]  ;;  %v73_v1 = vld [vmem:[%s7296_s29 + $0x8] sm:$0xff]  ;;  %v74_v2 = vld [vmem:[%s7296_s29 + $0x10] sm:$0xff] }
   0xf   :  { %v5725_v3 = vpack.c.bf16 %v73_v1, %v72_v0  ;;  %v75_v4 = vld [vmem:[%s7296_s29 + $0x18] sm:$0xff]  ;;  %v5733_v5 = vld [vmem:[%s7297_s25 + $0x20] sm:$0xff]  ;;  %v3668_v7 = vld [vmem:[%s7298_s27 + $0x30] sm:$0xff] }
  0x10   :  { %v5735_v6 = vpack.c.bf16 %v75_v4, %v74_v2  ;;  %4344 = vmatprep.mubr.msk.f32.mxu1 %vm81_vm0, %v5733_v5  ;;  %v3669_v8 = vld [vmem:[%s7298_s27 + $0x38] sm:$0xff]  ;;  %v5752_v9 = vld [vmem:[%s7297_s25] sm:$0xff] }
  0x11   :  { %4925 = vmatprep.subr.bf16.mxu1 %v5725_v3  ;;  %4917 = vmatprep.subr.bf16.mxu0 %v5725_v3  ;;  %v4932_v10 = vpack.c.bf16 %v3669_v8, %v3668_v7 }
  0x12   :  { %4927 = vmatpush3.bf16.msra.mxu1 %v5725_v3  ;;  %4919 = vmatpush3.bf16.msra.mxu0 %v5725_v3 }
  0x13   :  { %4929 = vmatprep.subr.bf16.mxu1 %v5735_v6  ;;  %4921 = vmatprep.subr.bf16.mxu0 %v5735_v6 }
  0x14   :  { %27 = vsyncpa [#allocation3], 0  ;;  %v3670_v11 = vld [vmem:[%s7298_s27 + $0x40] sm:$0xff]  ;;  %v3671_v12 = vld [vmem:[%s7298_s27 + $0x48] sm:$0xff]  ;;  %4330 = vmatprep.mubr.msk.f32.mxu0 %vm81_vm0, %v5752_v9  ;;  %vm294_vm1 = vcmask 392192   ;;  %s7299_s4 = sld [smem:[#allocation8_spill]] }
  0x15   :  { %v5768_v13 = vld [vmem:[%s7297_s25 + $0x28] sm:$0xff]  ;;  %v5779_v15 = vld [vmem:[%s7297_s25 + $0x30] sm:$0xff]  ;;  %v4936_v16 = vpack.c.bf16 %v3671_v12, %v3670_v11  ;;  %v3673_v18 = vld [vmem:[%s7298_s27 + $0x58] sm:$0xff]  ;;  %s7300_s1 = sld [smem:[#allocation9_spill]]  ;;  %s7301_s0 = sld [smem:[#allocation11_spill]]  ;;  %vm1844_vm2 = vcmask 523264  }
  0x16   :  { %4931 = vmatpush3.bf16.msra.mxu1 %v5735_v6  ;;  %4923 = vmatpush3.bf16.msra.mxu0 %v5735_v6  ;;  %v5774_v14 = vld [vmem:[%s7297_s25 + $0x8] sm:$0xff]  ;;  %v3672_v17 = vld [vmem:[%s7298_s27 + $0x50] sm:$0xff]  ;;  %v5796_v19 = vld [vmem:[%s7297_s25 + $0x38] sm:$0xff]  ;;  %s7302_s6 = sld [smem:[#allocation10_spill]]  ;;  %vm5598_vm3 = vmmov 0   ;;  %vm1931_vm4 = vcmask 130048  }
  0x17   :  { %4933 = vmatprep.subr.bf16.mxu1 %v4932_v10  ;;  %v4940_v20 = vpack.c.bf16 %v3673_v18, %v3672_v17  ;;  %v5804_v21 = vld [vmem:[%s7297_s25 + $0x10] sm:$0xff]  ;;  %v5811_v22 = vld [vmem:[%s7297_s25 + $0x18] sm:$0xff]  ;;  %v179_v23 = vld [vmem:[%s7298_s27] sm:$0xff]  ;;  %vm2597_vm5 = vcmask 64512   ;;  %vm3640_vm6 = vcmask 74752  }
  0x18   :  { %v180_v24 = vld [vmem:[%s7298_s27 + $0x8] sm:$0xff]  ;;  %v181_v25 = vld [vmem:[%s7298_s27 + $0x10] sm:$0xff]  ;;  %v182_v27 = vld [vmem:[%s7298_s27 + $0x18] sm:$0xff] }
  0x19   :  { %4345 = vmatmul.mubr.msk.f32.vlgmr.msra.gmra.mrb[0].mxu1 %vm81_vm0, %v5768_v13  ;;  %4331 = vmatmul.mubr.msk.f32.vlgmr.msra.gmra.mrb[0].mxu0 %vm81_vm0, %v5774_v14  ;;  %v4944_v26 = vpack.c.bf16 %v180_v24, %v179_v23  ;;  %v4948_v28 = vpack.c.bf16 %v182_v27, %v181_v25  ;;  %v183_v29 = vld [vmem:[%s7298_s27 + $0x20] sm:$0xff]  ;;  %v184_v30 = vld [vmem:[%s7298_s27 + $0x28] sm:$0xff]  ;;  %v5860_v43 = vld [vmem:[%s7297_s25 + $0x50] sm:$0xff] }
  0x1a   :  { %4347 = vmatprep.mubr.msk.f32.mxu1 %vm81_vm0, %v5779_v15  ;;  %4935 = vmatpush3.bf16.msra.mxu1 %v4932_v10  ;;  %v4952_v31 = vpack.c.bf16 %v184_v30, %v183_v29  ;;  %v3690_v32 = vld [vmem:[%s7298_s27 + $0x60] sm:$0xff]  ;;  %v3691_v33 = vld [vmem:[%s7298_s27 + $0x68] sm:$0xff]  ;;  %v5869_v44 = vld [vmem:[%s7297_s25 + $0x58] sm:$0xff] }
  0x1b   :  { %4937 = vmatprep.subr.bf16.mxu1 %v4936_v16  ;;  %4333 = vmatprep.mubr.msk.f32.mxu0 %vm81_vm0, %v5804_v21  ;;  %v4964_v34 = vpack.c.bf16 %v3691_v33, %v3690_v32  ;;  %v3682_v41 = vld [vmem:[%s7297_s25 + $0x40] sm:$0xff]  ;;  %v5855_v42 = vld [vmem:[%s7297_s25 + $0x48] sm:$0xff]  ;;  %v3692_v45 = vld [vmem:[%s7298_s27 + $0x70] sm:$0xff] }
  0x1c   :  { %4945 = vmatprep.subr.bf16.mxu0 %v4944_v26  ;;  %v3693_v46 = vld [vmem:[%s7298_s27 + $0x78] sm:$0xff]  ;;  %v3694_v50 = vld [vmem:[%s7298_s27 + $0x80] sm:$0xff]  ;;  %v3695_v51 = vld [vmem:[%s7298_s27 + $0x88] sm:$0xff] }
  0x1d   :  { %4348 = vmatmul.mubr.msk.f32.gmra.mrb[2].mxu1 %vm81_vm0, %v5796_v19  ;;  %4334 = vmatmul.mubr.msk.f32.gmra.mrb[2].mxu0 %vm81_vm0, %v5811_v22  ;;  %v4968_v47 = vpack.c.bf16 %v3693_v46, %v3692_v45  ;;  %v4972_v52 = vpack.c.bf16 %v3695_v51, %v3694_v50  ;;  %v3700_v61 = vld [vmem:[%s7299_s4] ss:$0 sm:$0xff]  ;;  %v3710_v24 = vld [vmem:[%s7300_s1 + $0x88] sm:$0xff]  ;;  %v3716_v29 = vld [vmem:[%s7300_s1 + $0xb8] sm:$0xff] }
  0x1e   :  { %4939 = vmatpush3.bf16.msra.mxu1 %v4936_v16  ;;  %4947 = vmatpush3.bf16.msra.mxu0 %v4944_v26  ;;  %v3709_v23 = vld [vmem:[%s7300_s1 + $0x80] sm:$0xff]  ;;  %v3711_v26 = vld [vmem:[%s7300_s1 + $0x90] sm:$0xff]  ;;  %v3718_v30 = vld [vmem:[%s7300_s1 + $0xc8] sm:$0xff] }
  0x1f   :  { %4941 = vmatprep.subr.bf16.mxu1 %v4940_v20  ;;  %4949 = vmatprep.subr.bf16.mxu0 %v4948_v28  ;;  %v4992_v25 = vpack.c.bf16 %v3710_v24, %v3709_v23  ;;  %v3713_v27 = vld [vmem:[%s7300_s1 + $0xa0] sm:$0xff]  ;;  %v3719_v32 = vld [vmem:[%s7300_s1 + $0xd0] sm:$0xff]  ;;  %v3732_v23 = vld [vmem:[%s7300_s1 + $0x118] sm:$0xff] }
  0x20   :  { %v801_v51 = vld [vmem:[%s7300_s1 + $0x10] sm:$0xff] }
  0x22   :  { %4943 = vmatpush3.bf16.msra.mxu1 %v4940_v20  ;;  %4951 = vmatpush3.bf16.msra.mxu0 %v4948_v28  ;;  %v3714_v28 = vld [vmem:[%s7300_s1 + $0xa8] sm:$0xff] }
  0x23   :  { %4957 = vmatprep.subr.bf16.mxu1 %v5725_v3  ;;  %4953 = vmatprep.subr.bf16.mxu0 %v4952_v31 }
  0x26   :  { %4955 = vmatpush3.bf16.msra.mxu0 %v4952_v31 }
  0x27   :  { %4965 = vmatprep.subr.bf16.mxu0 %v4964_v34 }
  0xec   :  { %v4346_v35 = vpop.f32.mrb[0].mxu1  ;;  %v4332_v36 = vpop.f32.mrb[0].mxu0 }
  0xed   :  { %v268_v37 = vpop.f32.mrb[1].mxu1  ;;  %v160_v38 = vpop.f32.mrb[1].mxu0 }
  0xee   :  { %4362 = vmatprep.mubr.msk.f32.mxu1 %vm294_vm1, %v268_v37  ;;  %4380 = vmatprep.mubr.msk.f32.mxu0 %vm294_vm1, %v160_v38  ;;  %v3723_v37 = vld [vmem:[%s7300_s1 + $0xf0] sm:$0xff]  ;;  %v3724_v38 = vld [vmem:[%s7300_s1 + $0xf8] sm:$0xff] }
  0xef   :  { %4363 = vmatmul.mubr.msk.f32.vlgmr.msra.gmra.mrb[4].mxu1 %vm294_vm1, %v4346_v35  ;;  %4381 = vmatmul.mubr.msk.f32.vlgmr.msra.gmra.mrb[4].mxu0 %vm294_vm1, %v4332_v36  ;;  %v3722_v35 = vld [vmem:[%s7300_s1 + $0xe8] sm:$0xff] }
  0xf0   :  { %v4349_v39 = vpop.f32.mrb[2].mxu1  ;;  %4959 = vmatpush3.bf16.msra.mxu1 %v5725_v3  ;;  %4967 = vmatpush3.bf16.msra.mxu0 %v4964_v34  ;;  %v4335_v48 = vpop.f32.mrb[2].mxu0  ;;  %v3721_v34 = vld [vmem:[%s7300_s1 + $0xe0] sm:$0xff] }
  0xf1   :  { %v278_v40 = vpop.f32.mrb[3].mxu1  ;;  %4961 = vmatprep.subr.bf16.mxu1 %v5735_v6  ;;  %v170_v49 = vpop.f32.mrb[3].mxu0  ;;  %4969 = vmatprep.subr.bf16.mxu0 %v4968_v47  ;;  %v5016_v36 = vpack.c.bf16 %v3722_v35, %v3721_v34  ;;  %v3744_v34 = vld [vmem:[%s7300_s1 + $0x178] sm:$0xff] }
  0xf2   :  { %4365 = vmatprep.mubr.msk.f32.mxu1 %vm294_vm1, %v278_v40  ;;  %4383 = vmatprep.mubr.msk.f32.mxu0 %vm294_vm1, %v170_v49  ;;  %v799_v40 = vld [vmem:[%s7300_s1] sm:$0xff] }
  0xf3   :  { %4366 = vmatmul.mubr.msk.f32.gmra.mrb[6].mxu1 %vm294_vm1, %v4349_v39  ;;  %4384 = vmatmul.mubr.msk.f32.gmra.mrb[6].mxu0 %vm294_vm1, %v4335_v48  ;;  %v5020_v39 = vpack.c.bf16 %v3724_v38, %v3723_v37  ;;  %v3768_v37 = vld [vmem:[%s7301_s0 + $0x20] sm:$0xff] }
  0xf4   :  { %4963 = vmatpush3.bf16.msra.mxu1 %v5735_v6  ;;  %4394 = vmatprep.mubr.msk.f32.mxu1 %vm81_vm0, %v3682_v41  ;;  %v3745_v38 = vld [vmem:[%s7302_s6] ss:$0 sm:$0xff] }
  0xf5   :  { %4971 = vmatpush3.bf16.msra.mxu0 %v4968_v47 }
  0xf6   :  { %4973 = vmatprep.subr.bf16.mxu0 %v4972_v52 }
  0xf7   :  { %4395 = vmatmul.mubr.msk.f32.vlgmr.msra.gmra.mrb[8].mxu1 %vm81_vm0, %v5855_v42 }
  0xf8   :  { %4397 = vmatprep.mubr.msk.f32.mxu1 %vm81_vm0, %v5860_v43 }
  0xf9   :  { %4975 = vmatpush3.bf16.msra.mxu0 %v4972_v52  ;;  %v802_v52 = vld [vmem:[%s7300_s1 + $0x18] sm:$0xff] }
  0xfb   :  { %4398 = vmatmul.mubr.msk.f32.gmra.mrb[10].mxu1 %vm81_vm0, %v5869_v44 }
  0xfc   :  { %4426 = vmatprep.mubr.msk.f32.mxu1 %vm81_vm0, %v5752_v9 }
 0x1c2   :  { %v4364_v53 = vpop.f32.mrb[4].mxu1 }
 0x1c3   :  { %v373_v54 = vpop.f32.mrb[5].mxu1 }
 0x1c6   :  { %v4367_v55 = vpop.f32.mrb[6].mxu1 }
 0x1c7   :  { %v383_v56 = vpop.f32.mrb[7].mxu1 }
 0x1ca   :  { %v4396_v57 = vpop.f32.mrb[8].mxu1 }
 0x1cb   :  { %v572_v58 = vpop.f32.mrb[9].mxu1 }
 0x1cc   :  { %4412 = vmatprep.mubr.msk.f32.mxu0 %vm294_vm1, %v572_v58 }
 0x1cd   :  { %4413 = vmatmul.mubr.msk.f32.vlgmr.msra.gmra.mrb[4].mxu0 %vm294_vm1, %v4396_v57  ;;  %v804_v57 = vld [vmem:[%s7300_s1 + $0x28] sm:$0xff] }
 0x1ce   :  { %v4399_v59 = vpop.f32.mrb[10].mxu1 }
 0x1cf   :  { %v582_v60 = vpop.f32.mrb[11].mxu1 }
 0x1d0   :  { %4415 = vmatprep.mubr.msk.f32.mxu0 %vm294_vm1, %v582_v60 }
 0x1d1   :  { %4416 = vmatmul.mubr.msk.f32.gmra.mrb[6].mxu0 %vm294_vm1, %v4399_v59 }
 0x1d2   :  { %4530 = vmatprep.mubr.msk.f32.mxu0 %vm81_vm0, %v3682_v41  ;;  %v800_v41 = vld [vmem:[%s7300_s1 + $0x8] sm:$0xff] }
 0x2a0   :  { %v4414_v62 = vpop.f32.mrb[4].mxu0 }
 0x2a1   :  { %v5549_v63 = vadd.f32 %v4414_v62, %v4364_v53  ;;  %v676_v0 = vpop.f32.mrb[5].mxu0  ;;  %v806_v62 = vld [vmem:[%s7300_s1 + $0x38] sm:$0xff] }
 0x2a2   :  { %v5550_v1 = vadd.f32 %v676_v0, %v373_v54  ;;  %v807_v0 = vld [vmem:[%s7300_s1 + $0x40] sm:$0xff] }
 0x2a3   :  { %v706_v2 = vadd.f32 %v5549_v63, %v3700_v61 }
 0x2a4   :  { %v705_v3 = vadd.f32 %v5550_v1, %v3700_v61  ;;  %v4417_v4 = vpop.f32.mrb[6].mxu0  ;;  %v808_v1 = vld [vmem:[%s7300_s1 + $0x48] sm:$0xff] }
 0x2a5   :  { %v710_v6 = vmax.f32 %v706_v2, 0.0  ;;  %v5551_v7 = vadd.f32 %v4417_v4, %v4367_v55  ;;  %v686_v8 = vpop.f32.mrb[7].mxu0  ;;  %v5028_v55 = vpack.c.bf16 %v802_v52, %v801_v51  ;;  %v5040_v2 = vpack.c.bf16 %v808_v1, %v807_v0  ;;  %v810_v4 = vld [vmem:[%s7300_s1 + $0x58] sm:$0xff]  ;;  %v3757_v0 = vld [vmem:[%s7268_s7 + $0xa8] sm:$0xff] }
 0x2a6   :  { %v709_v9 = vmax.f32 %v705_v3, 0.0  ;;  %v5552_v10 = vadd.f32 %v686_v8, %v383_v56  ;;  %v803_v56 = vld [vmem:[%s7300_s1 + $0x20] sm:$0xff]  ;;  %v809_v3 = vld [vmem:[%s7300_s1 + $0x50] sm:$0xff]  ;;  %v812_v8 = vld [vmem:[%s7300_s1 + $0x68] sm:$0xff] }
 0x2a7   :  { %v708_v11 = vadd.f32 %v5551_v7, %v3700_v61  ;;  %v5032_v60 = vpack.c.bf16 %v804_v57, %v803_v56  ;;  %v811_v7 = vld [vmem:[%s7300_s1 + $0x60] sm:$0xff]  ;;  %v3753_v57 = vld [vmem:[%s7268_s7 + $0x88] sm:$0xff] }
 0x2a8   :  { %v4976_v12 = vpack.c.bf16 %v710_v6, %v709_v9  ;;  %v707_v16 = vadd.f32 %v5552_v10, %v3700_v61  ;;  %v805_v61 = vld [vmem:[%s7300_s1 + $0x30] sm:$0xff]  ;;  %v5044_v6 = vpack.c.bf16 %v810_v4, %v809_v3  ;;  %v5048_v9 = vpack.c.bf16 %v812_v8, %v811_v7  ;;  %v3752_v56 = vld [vmem:[%s7268_s7 + $0x80] sm:$0xff]  ;;  %v3759_v3 = vld [vmem:[%s7268_s7 + $0xb8] sm:$0xff] }
 0x2a9   :  { %v712_v17 = vmax.f32 %v708_v11, 0.0  ;;  %v5036_v63 = vpack.c.bf16 %v806_v62, %v805_v61  ;;  %v813_v10 = vld [vmem:[%s7300_s1 + $0x70] sm:$0xff]  ;;  %v814_v11 = vld [vmem:[%s7300_s1 + $0x78] sm:$0xff]  ;;  %v3761_v7 = vld [vmem:[%s7268_s7 + $0xc8] sm:$0xff] }
 0x2aa   :  { %v711_v18 = vmax.f32 %v707_v16, 0.0  ;;  %4977 = vmatprep.subr.bf16.mxu1 %v4976_v12  ;;  %5057 = vmatprep.subr.bf16.mxu0 %v4976_v12  ;;  %v3729_v16 = vld [vmem:[%s7300_s1 + $0x100] sm:$0xff]  ;;  %v3749_v61 = vld [vmem:[%s7301_s0 + $0x18] sm:$0xff] }
 0x2ab   :  { %4979 = vmatpush3.bf16.msra.mxu1 %v4976_v12  ;;  %5059 = vmatpush3.bf16.msra.mxu0 %v4976_v12 }
 0x2ac   :  { %v4980_v20 = vpack.c.bf16 %v712_v17, %v711_v18  ;;  %v3730_v17 = vld [vmem:[%s7300_s1 + $0x108] sm:$0xff] }
 0x2ad   :  { %v5064_v18 = vpack.c.bf16 %v3730_v17, %v3729_v16  ;;  %v3765_v16 = vld [vmem:[%s7268_s7 + $0xe8] sm:$0xff] }
 0x2ae   :  { %4981 = vmatprep.subr.bf16.mxu1 %v4980_v20  ;;  %5061 = vmatprep.subr.bf16.mxu0 %v4980_v20 }
 0x2af   :  { %4983 = vmatpush3.bf16.msra.mxu1 %v4980_v20  ;;  %5063 = vmatpush3.bf16.msra.mxu0 %v4980_v20 }
 0x2b0   :  { %4985 = vmatprep.subr.bf16.mxu1 %v4976_v12 }
 0x2b2   :  { %4427 = vmatmul.mubr.msk.f32.vlgmr.msra.gmra.mrb[12].mxu1 %vm81_vm0, %v5774_v14  ;;  %4531 = vmatmul.mubr.msk.f32.vlgmr.msra.gmra.mrb[8].mxu0 %vm81_vm0, %v5855_v42  ;;  %v3712_v14 = vld [vmem:[%s7300_s1 + $0x98] sm:$0xff]  ;;  %v5024_v42 = vpack.c.bf16 %v800_v41, %v799_v40 }
 0x2b3   :  { %4987 = vmatpush3.bf16.msra.mxu1 %v4976_v12  ;;  %4429 = vmatprep.mubr.msk.f32.mxu1 %vm81_vm0, %v5804_v21  ;;  %v4996_v21 = vpack.c.bf16 %v3712_v14, %v3711_v26  ;;  %v5052_v12 = vpack.c.bf16 %v814_v11, %v813_v10  ;;  %v3734_v26 = vld [vmem:[%s7300_s1 + $0x128] sm:$0xff]  ;;  %v3763_v10 = vld [vmem:[%s7268_s7 + $0xd8] sm:$0xff] }
 0x2b4   :  { %4989 = vmatprep.subr.bf16.mxu1 %v4980_v20  ;;  %4533 = vmatprep.mubr.msk.f32.mxu0 %vm81_vm0, %v5860_v43 }
 0x2b6   :  { %4430 = vmatmul.mubr.msk.f32.gmra.mrb[14].mxu1 %vm81_vm0, %v5811_v22  ;;  %4534 = vmatmul.mubr.msk.f32.gmra.mrb[10].mxu0 %vm81_vm0, %v5869_v44  ;;  %v5000_v22 = vpack.c.bf16 %v3714_v28, %v3713_v27  ;;  %v3736_v27 = vld [vmem:[%s7300_s1 + $0x138] sm:$0xff] }
 0x2b7   :  { %4991 = vmatpush3.bf16.msra.mxu1 %v4980_v20  ;;  %4440 = vmatprep.mubr.msk.f32.mxu1 %vm81_vm0, %v5733_v5  ;;  %v3715_v5 = vld [vmem:[%s7300_s1 + $0xb0] sm:$0xff] }
 0x2b8   :  { %4993 = vmatprep.subr.bf16.mxu1 %v4992_v25  ;;  %v3731_v20 = vld [vmem:[%s7300_s1 + $0x110] sm:$0xff] }
 0x2b9   :  { %v5068_v24 = vpack.c.bf16 %v3732_v23, %v3731_v20  ;;  %v3767_v20 = vld [vmem:[%s7268_s7 + $0xf8] sm:$0xff] }
 0x2ba   :  { %4441 = vmatmul.mubr.msk.f32.vlgmr.msra.gmra.mrb[16].mxu1 %vm81_vm0, %v5768_v13  ;;  %v5004_v13 = vpack.c.bf16 %v3716_v29, %v3715_v5  ;;  %v3738_v5 = vld [vmem:[%s7300_s1 + $0x148] sm:$0xff] }
 0x2bb   :  { %4443 = vmatprep.mubr.msk.f32.mxu1 %vm81_vm0, %v5779_v15  ;;  %4995 = vmatpush3.bf16.msra.mxu1 %v4992_v25  ;;  %v3717_v15 = vld [vmem:[%s7300_s1 + $0xc0] sm:$0xff] }
 0x2bc   :  { %4997 = vmatprep.subr.bf16.mxu1 %v4996_v21  ;;  %v5008_v31 = vpack.c.bf16 %v3718_v30, %v3717_v15  ;;  %v3733_v25 = vld [vmem:[%s7300_s1 + $0x120] sm:$0xff]  ;;  %v3740_v15 = vld [vmem:[%s7300_s1 + $0x158] sm:$0xff] }
 0x2bd   :  { %v5072_v14 = vpack.c.bf16 %v3734_v26, %v3733_v25  ;;  %v1378_v25 = vld [vmem:[%s7268_s7 + $0x8] sm:$0xff] }
 0x2be   :  { %4444 = vmatmul.mubr.msk.f32.gmra.mrb[18].mxu1 %vm81_vm0, %v5796_v19  ;;  %v3720_v19 = vld [vmem:[%s7300_s1 + $0xd8] sm:$0xff] }
 0x2bf   :  { %4999 = vmatpush3.bf16.msra.mxu1 %v4996_v21  ;;  %v5012_v33 = vpack.c.bf16 %v3720_v19, %v3719_v32  ;;  %v3735_v21 = vld [vmem:[%s7300_s1 + $0x130] sm:$0xff]  ;;  %v3742_v32 = vld [vmem:[%s7300_s1 + $0x168] sm:$0xff] }
 0x2c0   :  { %5001 = vmatprep.subr.bf16.mxu1 %v5000_v22  ;;  %v5076_v28 = vpack.c.bf16 %v3736_v27, %v3735_v21  ;;  %v1831_v21 = vld [vmem:[%s7270_s9 + $0x8] sm:$0xff]  ;;  %v1832_v27 = vld [vmem:[%s7270_s9 + $0x10] sm:$0xff] }
 0x2c3   :  { %5003 = vmatpush3.bf16.msra.mxu1 %v5000_v22  ;;  %v3737_v22 = vld [vmem:[%s7300_s1 + $0x140] sm:$0xff] }
 0x2c4   :  { %5005 = vmatprep.subr.bf16.mxu1 %v5004_v13  ;;  %v5080_v29 = vpack.c.bf16 %v3738_v5, %v3737_v22  ;;  %v1833_v22 = vld [vmem:[%s7270_s9 + $0x18] sm:$0xff] }
 0x2c5   :  { %v5220_v5 = vpack.c.bf16 %v1833_v22, %v1832_v27  ;;  %v5597_v22 = vmov 0.0|0.0  }
 0x2c7   :  { %5007 = vmatpush3.bf16.msra.mxu1 %v5004_v13  ;;  %v3739_v13 = vld [vmem:[%s7300_s1 + $0x150] sm:$0xff] }
 0x2c8   :  { %5009 = vmatprep.subr.bf16.mxu1 %v5008_v31  ;;  %v5084_v30 = vpack.c.bf16 %v3740_v15, %v3739_v13  ;;  %v1835_v13 = vld [vmem:[%s7270_s9 + $0x28] sm:$0xff] }
 0x2cb   :  { %5011 = vmatpush3.bf16.msra.mxu1 %v5008_v31  ;;  %v3741_v31 = vld [vmem:[%s7300_s1 + $0x160] sm:$0xff] }
 0x2cc   :  { %5013 = vmatprep.subr.bf16.mxu1 %v5012_v33  ;;  %v5088_v19 = vpack.c.bf16 %v3742_v32, %v3741_v31 }
 0x2cf   :  { %5015 = vmatpush3.bf16.msra.mxu1 %v5012_v33  ;;  %v3743_v33 = vld [vmem:[%s7300_s1 + $0x170] sm:$0xff] }
 0x2d0   :  { %5017 = vmatprep.subr.bf16.mxu1 %v5016_v36  ;;  %v5092_v35 = vpack.c.bf16 %v3744_v34, %v3743_v33  ;;  %v1379_v33 = vld [vmem:[%s7268_s7 + $0x10] sm:$0xff]  ;;  %v1380_v34 = vld [vmem:[%s7268_s7 + $0x18] sm:$0xff] }
 0x2d3   :  { %5019 = vmatpush3.bf16.msra.mxu1 %v5016_v36  ;;  %v1294_v36 = vld [vmem:[%s7301_s0] sm:$0xff] }
 0x2d4   :  { %5021 = vmatprep.subr.bf16.mxu1 %v5020_v39  ;;  %4582 = vmatprep.mubr.msk.f32.mxu0 %vm81_vm0, %v1294_v36 }
 0x2d7   :  { %5023 = vmatpush3.bf16.msra.mxu1 %v5020_v39 }
 0x2d8   :  { %5025 = vmatprep.subr.bf16.mxu1 %v5024_v42 }
 0x385   :  { %v4428_v43 = vpop.f32.mrb[12].mxu1  ;;  %v5971_v44 = vpop.f32.mrb[8].mxu0 }
 0x386   :  { %v780_v45 = vpop.f32.mrb[13].mxu1  ;;  %v5973_v46 = vpop.f32.mrb[9].mxu0 }
 0x389   :  { %v5975_v47 = vpop.f32.mrb[14].mxu1  ;;  %v5977_v48 = vpop.f32.mrb[10].mxu0 }
 0x38a   :  { %v790_v49 = vpop.f32.mrb[15].mxu1  ;;  %v5979_v50 = vpop.f32.mrb[11].mxu0 }
 0x38d   :  { %v4442_v53 = vpop.f32.mrb[16].mxu1 }
 0x38e   :  { %v881_v54 = vpop.f32.mrb[17].mxu1 }
 0x38f   :  { %4478 = vmatprep.mubr.f32.mxu1 %v881_v54  ;;  %v3769_v54 = vld [vmem:[%s7301_s0 + $0x28] sm:$0xff] }
 0x390   :  { %4479 = vmatmul.mubr.f32.vlgmr.msra.gmra.mrb[20].mxu1 %v4442_v53  ;;  %v1295_v53 = vld [vmem:[%s7301_s0 + $0x8] sm:$0xff] }
 0x391   :  { %5027 = vmatpush3.bf16.msra.mxu1 %v5024_v42  ;;  %v4445_v58 = vpop.f32.mrb[18].mxu1 }
 0x392   :  { %v891_v59 = vpop.f32.mrb[19].mxu1  ;;  %5029 = vmatprep.subr.bf16.mxu1 %v5028_v55 }
 0x393   :  { %4481 = vmatprep.mubr.f32.mxu1 %v891_v59  ;;  %v3754_v59 = vld [vmem:[%s7268_s7 + $0x90] sm:$0xff] }
 0x394   :  { %4482 = vmatmul.mubr.f32.gmra.mrb[22].mxu1 %v4445_v58  ;;  %v5112_v58 = vpack.c.bf16 %v3753_v57, %v3752_v56  ;;  %v3772_v56 = vld [vmem:[%s7268_s7 + $0x100] sm:$0xff]  ;;  %v3773_v57 = vld [vmem:[%s7268_s7 + $0x108] sm:$0xff] }
 0x395   :  { %5031 = vmatpush3.bf16.msra.mxu1 %v5028_v55  ;;  %4516 = vmatprep.mubr.f32.mxu1 %v780_v45  ;;  %v3748_v55 = vld [vmem:[%s7301_s0 + $0x10] sm:$0xff] }
 0x396   :  { %5033 = vmatprep.subr.bf16.mxu1 %v5032_v60 }
 0x399   :  { %5035 = vmatpush3.bf16.msra.mxu1 %v5032_v60  ;;  %v3755_v60 = vld [vmem:[%s7268_s7 + $0x98] sm:$0xff] }
 0x39a   :  { %5037 = vmatprep.subr.bf16.mxu1 %v5036_v63  ;;  %v5116_v62 = vpack.c.bf16 %v3755_v60, %v3754_v59  ;;  %v3774_v59 = vld [vmem:[%s7268_s7 + $0x110] sm:$0xff]  ;;  %v3775_v60 = vld [vmem:[%s7268_s7 + $0x118] sm:$0xff] }
 0x39d   :  { %5039 = vmatpush3.bf16.msra.mxu1 %v5036_v63  ;;  %v3756_v63 = vld [vmem:[%s7268_s7 + $0xa0] sm:$0xff] }
 0x39e   :  { %5041 = vmatprep.subr.bf16.mxu1 %v5040_v2  ;;  %v5120_v1 = vpack.c.bf16 %v3757_v0, %v3756_v63  ;;  %v3777_v63 = vld [vmem:[%s7268_s7 + $0x128] sm:$0xff] }
 0x3a1   :  { %5043 = vmatpush3.bf16.msra.mxu1 %v5040_v2  ;;  %v3758_v2 = vld [vmem:[%s7268_s7 + $0xb0] sm:$0xff] }
 0x3a2   :  { %5045 = vmatprep.subr.bf16.mxu1 %v5044_v6  ;;  %v5124_v4 = vpack.c.bf16 %v3759_v3, %v3758_v2  ;;  %v3779_v2 = vld [vmem:[%s7268_s7 + $0x138] sm:$0xff] }
 0x3a5   :  { %5047 = vmatpush3.bf16.msra.mxu1 %v5044_v6  ;;  %v3760_v6 = vld [vmem:[%s7268_s7 + $0xc0] sm:$0xff] }
 0x3a6   :  { %5049 = vmatprep.subr.bf16.mxu1 %v5048_v9  ;;  %v5128_v8 = vpack.c.bf16 %v3761_v7, %v3760_v6  ;;  %v3781_v6 = vld [vmem:[%s7268_s7 + $0x148] sm:$0xff] }
 0x3a9   :  { %5051 = vmatpush3.bf16.msra.mxu1 %v5048_v9  ;;  %v3762_v9 = vld [vmem:[%s7268_s7 + $0xd0] sm:$0xff] }
 0x3aa   :  { %5053 = vmatprep.subr.bf16.mxu1 %v5052_v12  ;;  %v5132_v11 = vpack.c.bf16 %v3763_v10, %v3762_v9  ;;  %v3783_v9 = vld [vmem:[%s7268_s7 + $0x158] sm:$0xff] }
 0x3ad   :  { %5055 = vmatpush3.bf16.msra.mxu1 %v5052_v12  ;;  %v3764_v12 = vld [vmem:[%s7268_s7 + $0xe0] sm:$0xff] }
 0x3ae   :  { %5065 = vmatprep.subr.bf16.mxu1 %v5064_v18  ;;  %v5136_v17 = vpack.c.bf16 %v3765_v16, %v3764_v12  ;;  %v3785_v12 = vld [vmem:[%s7268_s7 + $0x168] sm:$0xff] }
 0x3b0   :  { %4517 = vmatmul.mubr.f32.vlgmr.msra.gmra.mrb[20].mxu1 %v4428_v43 }
 0x3b1   :  { %4519 = vmatprep.mubr.f32.mxu1 %v790_v49  ;;  %5067 = vmatpush3.bf16.msra.mxu1 %v5064_v18  ;;  %v3766_v18 = vld [vmem:[%s7268_s7 + $0xf0] sm:$0xff] }
 0x3b2   :  { %5069 = vmatprep.subr.bf16.mxu1 %v5068_v24  ;;  %v5140_v23 = vpack.c.bf16 %v3767_v20, %v3766_v18  ;;  %v3787_v18 = vld [vmem:[%s7268_s7 + $0x178] sm:$0xff] }
 0x3b4   :  { %4520 = vmatmul.mubr.f32.gmra.mrb[22].mxu1 %v5975_v47 }
 0x3b5   :  { %5071 = vmatpush3.bf16.msra.mxu1 %v5068_v24  ;;  %4568 = vmatprep.mubr.f32.mxu1 %v5973_v46  ;;  %v1377_v24 = vld [vmem:[%s7268_s7] sm:$0xff] }
 0x3b6   :  { %5073 = vmatprep.subr.bf16.mxu1 %v5072_v14  ;;  %v5144_v26 = vpack.c.bf16 %v1378_v25, %v1377_v24  ;;  %v1837_v24 = vld [vmem:[%s7270_s9 + $0x38] sm:$0xff] }
 0x3b9   :  { %5075 = vmatpush3.bf16.msra.mxu1 %v5072_v14  ;;  %v1830_v14 = vld [vmem:[%s7270_s9] sm:$0xff] }
 0x3ba   :  { %5077 = vmatprep.subr.bf16.mxu1 %v5076_v28 }
 0x3bd   :  { %5079 = vmatpush3.bf16.msra.mxu1 %v5076_v28  ;;  %v5216_v28 = vpack.c.bf16 %v1831_v21, %v1830_v14 }
 0x3be   :  { %5081 = vmatprep.subr.bf16.mxu1 %v5080_v29 }
 0x3c1   :  { %5083 = vmatpush3.bf16.msra.mxu1 %v5080_v29  ;;  %v1834_v29 = vld [vmem:[%s7270_s9 + $0x20] sm:$0xff] }
 0x3c2   :  { %5085 = vmatprep.subr.bf16.mxu1 %v5084_v30  ;;  %v5224_v15 = vpack.c.bf16 %v1835_v13, %v1834_v29  ;;  %v2005_v29 = vld [vmem:[%s7273_s12] sm:$0xff]  ;;  %v2006_v13 = vld [vmem:[%s7273_s12 + $0x8] sm:$0xff] }
 0x3c5   :  { %5087 = vmatpush3.bf16.msra.mxu1 %v5084_v30 }
 0x3c6   :  { %5089 = vmatprep.subr.bf16.mxu1 %v5088_v19 }
 0x3c9   :  { %5091 = vmatpush3.bf16.msra.mxu1 %v5088_v19 }
 0x3ca   :  { %5093 = vmatprep.subr.bf16.mxu1 %v5092_v35 }
 0x3cd   :  { %5095 = vmatpush3.bf16.msra.mxu1 %v5092_v35 }
 0x3d0   :  { %4569 = vmatmul.mubr.f32.vlgmr.msra.gmra.mrb[20].mxu1 %v5971_v44 }
 0x3d1   :  { %4571 = vmatprep.mubr.f32.mxu1 %v5979_v50 }
 0x3d4   :  { %4572 = vmatmul.mubr.f32.gmra.mrb[22].mxu1 %v5977_v48 }
 0x3d5   :  { %4674 = vmatprep.mubr.msk.f32.mxu1 %vm81_vm0, %v3768_v37  ;;  %v5148_v37 = vpack.c.bf16 %v1380_v34, %v1379_v33  ;;  %v2010_v33 = vld [vmem:[%s7273_s12 + $0x28] sm:$0xff] }
 0x4a3   :  { %v4570_v39 = vpop.f32.mrb[20].mxu1 }
 0x4a4   :  { %v1285_v40 = vadd.f32 %v4570_v39, %v3745_v38  ;;  %v1255_v41 = vpop.f32.mrb[21].mxu1  ;;  %v1382_v39 = vld [vmem:[%s7268_s7 + $0x28] sm:$0xff] }
 0x4a5   :  { %v1284_v42 = vadd.f32 %v3745_v38, %v1255_v41  ;;  %v1383_v41 = vld [vmem:[%s7268_s7 + $0x30] sm:$0xff] }
 0x4a6   :  { %v1291_v43 = vmax.f32 %v1285_v40, 0.0 }
 0x4a7   :  { %v1290_v44 = vmax.f32 %v1284_v42, 0.0  ;;  %v4573_v45 = vpop.f32.mrb[22].mxu1  ;;  %v1384_v42 = vld [vmem:[%s7268_s7 + $0x38] sm:$0xff] }
 0x4a8   :  { %v1287_v46 = vadd.f32 %v4573_v45, %v3745_v38  ;;  %v1265_v47 = vpop.f32.mrb[23].mxu1  ;;  %v1386_v45 = vld [vmem:[%s7268_s7 + $0x48] sm:$0xff] }
 0x4a9   :  { %v5096_v48 = vpack.c.bf16 %v1291_v43, %v1290_v44  ;;  %v1286_v49 = vadd.f32 %v3745_v38, %v1265_v47  ;;  %v1381_v38 = vld [vmem:[%s7268_s7 + $0x20] sm:$0xff]  ;;  %v5156_v43 = vpack.c.bf16 %v1384_v42, %v1383_v41  ;;  %v1387_v47 = vld [vmem:[%s7268_s7 + $0x50] sm:$0xff]  ;;  %v2016_v42 = vld [vmem:[%s7273_s12 + $0x58] sm:$0xff] }
 0x4aa   :  { %v1293_v50 = vmax.f32 %v1287_v46, 0.0  ;;  %v5152_v40 = vpack.c.bf16 %v1382_v39, %v1381_v38  ;;  %v1385_v44 = vld [vmem:[%s7268_s7 + $0x40] sm:$0xff]  ;;  %v2014_v39 = vld [vmem:[%s7273_s12 + $0x48] sm:$0xff]  ;;  %v2015_v41 = vld [vmem:[%s7273_s12 + $0x50] sm:$0xff] }
 0x4ab   :  { %v1292_v51 = vmax.f32 %v1286_v49, 0.0  ;;  %5097 = vmatprep.subr.bf16.mxu0 %v5096_v48  ;;  %5177 = vmatprep.subr.bf16.mxu1 %v5096_v48  ;;  %v5160_v46 = vpack.c.bf16 %v1386_v45, %v1385_v44  ;;  %v2013_v38 = vld [vmem:[%s7273_s12 + $0x40] sm:$0xff]  ;;  %v2018_v45 = vld [vmem:[%s7273_s12 + $0x68] sm:$0xff] }
 0x4ac   :  { %5099 = vmatpush3.bf16.msra.mxu0 %v5096_v48  ;;  %5179 = vmatpush3.bf16.msra.mxu1 %v5096_v48  ;;  %v2017_v44 = vld [vmem:[%s7273_s12 + $0x60] sm:$0xff] }
 0x4ad   :  { %v5100_v52 = vpack.c.bf16 %v1293_v50, %v1292_v51  ;;  %v1389_v50 = vld [vmem:[%s7268_s7 + $0x60] sm:$0xff]  ;;  %v1390_v51 = vld [vmem:[%s7268_s7 + $0x68] sm:$0xff] }
 0x4af   :  { %5101 = vmatprep.subr.bf16.mxu0 %v5100_v52  ;;  %5181 = vmatprep.subr.bf16.mxu1 %v5100_v52 }
 0x4b0   :  { %5103 = vmatpush3.bf16.msra.mxu0 %v5100_v52  ;;  %5183 = vmatpush3.bf16.msra.mxu1 %v5100_v52 }
 0x4b1   :  { %5105 = vmatprep.subr.bf16.mxu0 %v5096_v48  ;;  %5217 = vmatprep.subr.bf16.mxu1 %v5216_v28 }
 0x4b3   :  { %4583 = vmatmul.mubr.msk.f32.vlgmr.msra.gmra.mrb[12].mxu0 %vm81_vm0, %v1295_v53  ;;  %4675 = vmatmul.mubr.msk.f32.vlgmr.msra.gmra.mrb[24].mxu1 %vm81_vm0, %v3769_v54  ;;  %v1391_v53 = vld [vmem:[%s7268_s7 + $0x70] sm:$0xff]  ;;  %v1392_v54 = vld [vmem:[%s7268_s7 + $0x78] sm:$0xff] }
 0x4b4   :  { %5107 = vmatpush3.bf16.msra.mxu0 %v5096_v48  ;;  %4593 = vmatprep.mubr.msk.f32.mxu0 %vm81_vm0, %v3748_v55  ;;  %v1388_v48 = vld [vmem:[%s7268_s7 + $0x58] sm:$0xff]  ;;  %v5172_v55 = vpack.c.bf16 %v1392_v54, %v1391_v53 }
 0x4b5   :  { %5109 = vmatprep.subr.bf16.mxu0 %v5100_v52  ;;  %5219 = vmatpush3.bf16.msra.mxu1 %v5216_v28  ;;  %v5164_v49 = vpack.c.bf16 %v1388_v48, %v1387_v47  ;;  %v2019_v47 = vld [vmem:[%s7273_s12 + $0x70] sm:$0xff]  ;;  %v2020_v48 = vld [vmem:[%s7273_s12 + $0x78] sm:$0xff] }
 0x4b6   :  { %5221 = vmatprep.subr.bf16.mxu1 %v5220_v5 }
 0x4b8   :  { %5111 = vmatpush3.bf16.msra.mxu0 %v5100_v52  ;;  %v5168_v52 = vpack.c.bf16 %v1390_v51, %v1389_v50  ;;  %v3789_v50 = vld [vmem:[%s7271_s10] ss:$0 sm:$0xff] }
 0x4b9   :  { %5113 = vmatprep.subr.bf16.mxu0 %v5112_v58  ;;  %5223 = vmatpush3.bf16.msra.mxu1 %v5220_v5  ;;  %v5599_v5 = vmov 0.0  }
 0x4ba   :  { %5225 = vmatprep.subr.bf16.mxu1 %v5224_v15 }
 0x4bb   :  { %4594 = vmatmul.mubr.msk.f32.vlgmr.msra.gmra.mrb[14].mxu0 %vm81_vm0, %v3749_v61  ;;  %v5188_v61 = vpack.c.bf16 %v3775_v60, %v3774_v59  ;;  %v3795_v59 = vld [vmem:[%s7273_s12 + $0x80] sm:$0xff]  ;;  %v3796_v60 = vld [vmem:[%s7273_s12 + $0x88] sm:$0xff] }
 0x4bc   :  { %5115 = vmatpush3.bf16.msra.mxu0 %v5112_v58  ;;  %v5184_v58 = vpack.c.bf16 %v3773_v57, %v3772_v56 }
 0x4bd   :  { %5117 = vmatprep.subr.bf16.mxu0 %v5116_v62  ;;  %5227 = vmatpush3.bf16.msra.mxu1 %v5224_v15  ;;  %v5263_v15 = vpack.c.bf16 %v2006_v13, %v2005_v29  ;;  %v3815_v29 = vld [vmem:[%s7273_s12 + $0x110] sm:$0xff]  ;;  %v3816_v13 = vld [vmem:[%s7273_s12 + $0x118] sm:$0xff] }
 0x4c0   :  { %5119 = vmatpush3.bf16.msra.mxu0 %v5116_v62  ;;  %v3776_v62 = vld [vmem:[%s7268_s7 + $0x120] sm:$0xff] }
 0x4c1   :  { %5121 = vmatprep.subr.bf16.mxu0 %v5120_v1  ;;  %v5192_v0 = vpack.c.bf16 %v3777_v63, %v3776_v62  ;;  %v5239_v62 = vpack.c.bf16 %v3796_v60, %v3795_v59  ;;  %v3797_v63 = vld [vmem:[%s7273_s12 + $0x90] sm:$0xff] }
 0x4c4   :  { %5123 = vmatpush3.bf16.msra.mxu0 %v5120_v1  ;;  %v3778_v1 = vld [vmem:[%s7268_s7 + $0x130] sm:$0xff] }
 0x4c5   :  { %5125 = vmatprep.subr.bf16.mxu0 %v5124_v4  ;;  %v5196_v3 = vpack.c.bf16 %v3779_v2, %v3778_v1  ;;  %v3799_v2 = vld [vmem:[%s7273_s12 + $0xa0] sm:$0xff] }
 0x4c8   :  { %5127 = vmatpush3.bf16.msra.mxu0 %v5124_v4  ;;  %v3780_v4 = vld [vmem:[%s7268_s7 + $0x140] sm:$0xff] }
 0x4c9   :  { %5129 = vmatprep.subr.bf16.mxu0 %v5128_v8  ;;  %v5200_v7 = vpack.c.bf16 %v3781_v6, %v3780_v4  ;;  %v3801_v6 = vld [vmem:[%s7273_s12 + $0xb0] sm:$0xff] }
 0x4cc   :  { %5131 = vmatpush3.bf16.msra.mxu0 %v5128_v8  ;;  %v3782_v8 = vld [vmem:[%s7268_s7 + $0x150] sm:$0xff] }
 0x4cd   :  { %5133 = vmatprep.subr.bf16.mxu0 %v5132_v11  ;;  %v5204_v10 = vpack.c.bf16 %v3783_v9, %v3782_v8  ;;  %v3803_v9 = vld [vmem:[%s7273_s12 + $0xc0] sm:$0xff] }
 0x4d0   :  { %5135 = vmatpush3.bf16.msra.mxu0 %v5132_v11  ;;  %v3784_v11 = vld [vmem:[%s7268_s7 + $0x160] sm:$0xff] }
 0x4d1   :  { %5137 = vmatprep.subr.bf16.mxu0 %v5136_v17  ;;  %v5208_v16 = vpack.c.bf16 %v3785_v12, %v3784_v11  ;;  %v3805_v12 = vld [vmem:[%s7273_s12 + $0xd0] sm:$0xff] }
 0x4d4   :  { %5139 = vmatpush3.bf16.msra.mxu0 %v5136_v17  ;;  %v3786_v17 = vld [vmem:[%s7268_s7 + $0x170] sm:$0xff] }
 0x4d5   :  { %5141 = vmatprep.subr.bf16.mxu0 %v5140_v23  ;;  %v5212_v20 = vpack.c.bf16 %v3787_v18, %v3786_v17  ;;  %v3807_v18 = vld [vmem:[%s7273_s12 + $0xe0] sm:$0xff] }
 0x4d8   :  { %5143 = vmatpush3.bf16.msra.mxu0 %v5140_v23  ;;  %v1836_v23 = vld [vmem:[%s7270_s9 + $0x30] sm:$0xff] }
 0x4d9   :  { %5145 = vmatprep.subr.bf16.mxu0 %v5144_v26  ;;  %v5228_v25 = vpack.c.bf16 %v1837_v24, %v1836_v23  ;;  %v3809_v24 = vld [vmem:[%s7273_s12 + $0xf0] sm:$0xff] }
 0x4db   :  { %5229 = vmatprep.subr.bf16.mxu1 %v5228_v25 }
 0x4dc   :  { %5231 = vmatpush3.bf16.msra.mxu1 %v5228_v25  ;;  %v3810_v25 = vld [vmem:[%s7273_s12 + $0xf8] sm:$0xff] }
 0x4dd   :  { %5232 = vmatprep.subr.bf16.mxu1 %v5597_v22 }
 0x586   :  { %v4584_v30 = vpop.f32.mrb[12].mxu0  ;;  %v6175_v31 = vpop.f32.mrb[24].mxu1 }
 0x587   :  { %v1368_v32 = vpop.f32.mrb[13].mxu0  ;;  %v1719_v19 = vpop.f32.mrb[25].mxu1 }
 0x58e   :  { %v4595_v35 = vpop.f32.mrb[14].mxu0 }
 0x58f   :  { %v1468_v36 = vpop.f32.mrb[15].mxu0 }
 0x590   :  { %4628 = vmatprep.mubr.f32.mxu0 %v1468_v36  ;;  %v2012_v36 = vld [vmem:[%s7273_s12 + $0x38] sm:$0xff] }
 0x591   :  { %4629 = vmatmul.mubr.f32.vlgmr.msra.gmra.mrb[16].mxu0 %v4595_v35  ;;  %v2011_v35 = vld [vmem:[%s7273_s12 + $0x30] sm:$0xff] }
 0x592   :  { %5147 = vmatpush3.bf16.msra.mxu0 %v5144_v26  ;;  %4663 = vmatprep.mubr.f32.mxu0 %v1368_v32  ;;  %v3788_v26 = vld [vmem:[%s7269_s8] ss:$0 sm:$0xff] }
 0x593   :  { %5149 = vmatprep.subr.bf16.mxu0 %v5148_v37 }
 0x596   :  { %5151 = vmatpush3.bf16.msra.mxu0 %v5148_v37  ;;  %v5272_v37 = vpack.c.bf16 %v2012_v36, %v2011_v35  ;;  %v3819_v36 = vld [vmem:[%s7273_s12 + $0x130] sm:$0xff] }
 0x597   :  { %5153 = vmatprep.subr.bf16.mxu0 %v5152_v40 }
 0x59a   :  { %5155 = vmatpush3.bf16.msra.mxu0 %v5152_v40  ;;  %v5275_v40 = vpack.c.bf16 %v2014_v39, %v2013_v38  ;;  %v3821_v39 = vld [vmem:[%s7273_s12 + $0x140] sm:$0xff] }
 0x59b   :  { %5157 = vmatprep.subr.bf16.mxu0 %v5156_v43 }
 0x59e   :  { %5159 = vmatpush3.bf16.msra.mxu0 %v5156_v43  ;;  %v5278_v43 = vpack.c.bf16 %v2016_v42, %v2015_v41  ;;  %v3823_v42 = vld [vmem:[%s7273_s12 + $0x150] sm:$0xff] }
 0x59f   :  { %5161 = vmatprep.subr.bf16.mxu0 %v5160_v46 }
 0x5a2   :  { %5163 = vmatpush3.bf16.msra.mxu0 %v5160_v46  ;;  %v5281_v46 = vpack.c.bf16 %v2018_v45, %v2017_v44  ;;  %v3825_v45 = vld [vmem:[%s7273_s12 + $0x160] sm:$0xff] }
 0x5a3   :  { %5165 = vmatprep.subr.bf16.mxu0 %v5164_v49 }
 0x5a6   :  { %5167 = vmatpush3.bf16.msra.mxu0 %v5164_v49  ;;  %v5284_v49 = vpack.c.bf16 %v2020_v48, %v2019_v47  ;;  %v3827_v48 = vld [vmem:[%s7273_s12 + $0x170] sm:$0xff] }
 0x5a7   :  { %5169 = vmatprep.subr.bf16.mxu0 %v5168_v52 }
 0x5aa   :  { %5171 = vmatpush3.bf16.msra.mxu0 %v5168_v52 }
 0x5ab   :  { %5173 = vmatprep.subr.bf16.mxu0 %v5172_v55 }
 0x5ae   :  { %5175 = vmatpush3.bf16.msra.mxu0 %v5172_v55 }
 0x5af   :  { %5185 = vmatprep.subr.bf16.mxu0 %v5184_v58 }
 0x5b1   :  { %4664 = vmatmul.mubr.f32.vlgmr.msra.gmra.mrb[16].mxu0 %v4584_v30  ;;  %v2007_v30 = vld [vmem:[%s7273_s12 + $0x10] sm:$0xff] }
 0x5b2   :  { %5187 = vmatpush3.bf16.msra.mxu0 %v5184_v58  ;;  %4709 = vmatprep.mubr.f32.mxu0 %v1719_v19  ;;  %v2009_v19 = vld [vmem:[%s7273_s12 + $0x20] sm:$0xff] }
 0x5b3   :  { %5189 = vmatprep.subr.bf16.mxu0 %v5188_v61  ;;  %v5269_v34 = vpack.c.bf16 %v2010_v33, %v2009_v19  ;;  %v1930_v58 = vld [vmem:[%s7272_s11] sm:$0xff]  ;;  %v3818_v19 = vld [vmem:[%s7273_s12 + $0x128] sm:$0xff] }
 0x5b6   :  { %5191 = vmatpush3.bf16.msra.mxu0 %v5188_v61  ;;  %v3793_v61 = vld [vmem:[%s7272_s11 + $0x8] sm:$0xff] }
 0x5b7   :  { %5193 = vmatprep.subr.bf16.mxu0 %v5192_v0 }
 0x5ba   :  { %5195 = vmatpush3.bf16.msra.mxu0 %v5192_v0  ;;  %v3798_v0 = vld [vmem:[%s7273_s12 + $0x98] sm:$0xff] }
 0x5bb   :  { %5197 = vmatprep.subr.bf16.mxu0 %v5196_v3  ;;  %v5242_v1 = vpack.c.bf16 %v3798_v0, %v3797_v63 }
 0x5be   :  { %5199 = vmatpush3.bf16.msra.mxu0 %v5196_v3  ;;  %v3800_v3 = vld [vmem:[%s7273_s12 + $0xa8] sm:$0xff] }
 0x5bf   :  { %5201 = vmatprep.subr.bf16.mxu0 %v5200_v7  ;;  %v5245_v4 = vpack.c.bf16 %v3800_v3, %v3799_v2  ;;  %v2429_v3 = vld [vmem:[%s7275_s14 + $0x30] sm:$0xff] }
 0x5c2   :  { %5203 = vmatpush3.bf16.msra.mxu0 %v5200_v7  ;;  %v3802_v7 = vld [vmem:[%s7273_s12 + $0xb8] sm:$0xff] }
 0x5c3   :  { %5205 = vmatprep.subr.bf16.mxu0 %v5204_v10  ;;  %v5248_v8 = vpack.c.bf16 %v3802_v7, %v3801_v6  ;;  %v2511_v7 = vld [vmem:[%s7278_s17] sm:$0xff] }
 0x5c6   :  { %5207 = vmatpush3.bf16.msra.mxu0 %v5204_v10  ;;  %v3804_v10 = vld [vmem:[%s7273_s12 + $0xc8] sm:$0xff] }
 0x5c7   :  { %5209 = vmatprep.subr.bf16.mxu0 %v5208_v16  ;;  %v5251_v11 = vpack.c.bf16 %v3804_v10, %v3803_v9  ;;  %v3829_v9 = vld [vmem:[%s7274_s13] ss:$0 sm:$0xff] }
 0x5ca   :  { %5211 = vmatpush3.bf16.msra.mxu0 %v5208_v16  ;;  %v3806_v16 = vld [vmem:[%s7273_s12 + $0xd8] sm:$0xff] }
 0x5cb   :  { %5213 = vmatprep.subr.bf16.mxu0 %v5212_v20  ;;  %v5254_v17 = vpack.c.bf16 %v3806_v16, %v3805_v12 }
 0x5ce   :  { %5215 = vmatpush3.bf16.msra.mxu0 %v5212_v20  ;;  %v3808_v20 = vld [vmem:[%s7273_s12 + $0xe8] sm:$0xff] }
 0x5cf   :  { %5262 = vmatprep.subr.bf16.mxu0 %v5597_v22  ;;  %v5257_v23 = vpack.c.bf16 %v3808_v20, %v3807_v18  ;;  %v2513_v18 = vld [vmem:[%s7278_s17 + $0x10] sm:$0xff]  ;;  %v2514_v20 = vld [vmem:[%s7278_s17 + $0x18] sm:$0xff] }
 0x5d1   :  { %4710 = vmatmul.mubr.f32.vlgmr.msra.gmra.mrb[16].mxu0 %v6175_v31  ;;  %v2008_v31 = vld [vmem:[%s7273_s12 + $0x18] sm:$0xff] }
 0x5d2   :  { %4812 = vmatprep.mubr.msk.f32.mxu0 %vm5598_vm3, %v5599_v5  ;;  %5264 = vmatpush3.bf16.msra.mxu0 %v5263_v15  ;;  %v5266_v32 = vpack.c.bf16 %v2008_v31, %v2007_v30  ;;  %v5293_v30 = vpack.c.bf16 %v3816_v13, %v3815_v29  ;;  %v2520_v29 = vld [vmem:[%s7278_s17 + $0x48] sm:$0xff] }
 0x5d3   :  { %5265 = vmatprep.subr.bf16.mxu0 %v5597_v22 }
 0x5d6   :  { %5267 = vmatpush3.bf16.msra.mxu0 %v5266_v32  ;;  %v3817_v32 = vld [vmem:[%s7273_s12 + $0x120] sm:$0xff] }
 0x5d7   :  { %5268 = vmatprep.subr.bf16.mxu0 %v5597_v22  ;;  %v5296_v35 = vpack.c.bf16 %v3818_v19, %v3817_v32  ;;  %v2523_v32 = vld [vmem:[%s7278_s17 + $0x60] sm:$0xff]  ;;  %v2524_v19 = vld [vmem:[%s7278_s17 + $0x68] sm:$0xff] }
 0x5da   :  { %5270 = vmatpush3.bf16.msra.mxu0 %v5269_v34  ;;  %v3811_v34 = vld [vmem:[%s7272_s11 + $0x10] sm:$0xff] }
 0x5db   :  { %5271 = vmatprep.subr.bf16.mxu0 %v5597_v22 }
 0x5de   :  { %5273 = vmatpush3.bf16.msra.mxu0 %v5272_v37  ;;  %v3820_v37 = vld [vmem:[%s7273_s12 + $0x138] sm:$0xff] }
 0x5df   :  { %5274 = vmatprep.subr.bf16.mxu0 %v5597_v22  ;;  %v5299_v38 = vpack.c.bf16 %v3820_v37, %v3819_v36  ;;  %v3830_v37 = vld [vmem:[%s7276_s15] ss:$0 sm:$0xff] }
 0x5e2   :  { %5276 = vmatpush3.bf16.msra.mxu0 %v5275_v40  ;;  %v3822_v40 = vld [vmem:[%s7273_s12 + $0x148] sm:$0xff] }
 0x5e3   :  { %5277 = vmatprep.subr.bf16.mxu0 %v5597_v22  ;;  %v5302_v41 = vpack.c.bf16 %v3822_v40, %v3821_v39 }
 0x5e6   :  { %5279 = vmatpush3.bf16.msra.mxu0 %v5278_v43  ;;  %v3824_v43 = vld [vmem:[%s7273_s12 + $0x158] sm:$0xff] }
 0x5e7   :  { %5280 = vmatprep.subr.bf16.mxu0 %v5597_v22  ;;  %v5305_v44 = vpack.c.bf16 %v3824_v43, %v3823_v42  ;;  %v2675_v43 = vld [vmem:[%s7279_s18 + $0x20] sm:$0xff] }
 0x5ea   :  { %5282 = vmatpush3.bf16.msra.mxu0 %v5281_v46  ;;  %v3826_v46 = vld [vmem:[%s7273_s12 + $0x168] sm:$0xff] }
 0x5eb   :  { %5283 = vmatprep.subr.bf16.mxu0 %v5597_v22  ;;  %v5308_v47 = vpack.c.bf16 %v3826_v46, %v3825_v45  ;;  %v2696_v46 = vld [vmem:[%s7279_s18 + $0xc8] sm:$0xff] }
 0x5ee   :  { %5285 = vmatpush3.bf16.msra.mxu0 %v5284_v49  ;;  %v3828_v49 = vld [vmem:[%s7273_s12 + $0x178] sm:$0xff] }
 0x5ef   :  { %5289 = vmatprep.subr.bf16.mxu0 %v5597_v22 }
 0x6a4   :  { %v4711_v14 = vpop.f32.mrb[16].mxu0 }
 0x6a5   :  { %v1811_v21 = vpop.f32.mrb[17].mxu0  ;;  %v1829_v28 = vadd.f32 %v4711_v14, %v3788_v26  ;;  %v3813_v14 = vld [vmem:[%s7273_s12 + $0x100] sm:$0xff] }
 0x6a6   :  { %v1828_v27 = vadd.f32 %v3788_v26, %v1811_v21  ;;  %v5260_v26 = vpack.c.bf16 %v3810_v25, %v3809_v24  ;;  %v3814_v21 = vld [vmem:[%s7273_s12 + $0x108] sm:$0xff]  ;;  %v2515_v24 = vld [vmem:[%s7278_s17 + $0x20] sm:$0xff] }
 0x6a7   :  { %v2516_v25 = vld [vmem:[%s7278_s17 + $0x28] sm:$0xff] }
 0x6a8   :  { %4728 = vmatprep.mubr.msk.f32.mxu1 %vm1844_vm2, %v1828_v27  ;;  %v5290_v27 = vpack.c.bf16 %v3814_v21, %v3813_v14  ;;  %v2517_v14 = vld [vmem:[%s7278_s17 + $0x30] sm:$0xff]  ;;  %v2518_v21 = vld [vmem:[%s7278_s17 + $0x38] sm:$0xff] }
 0x6a9   :  { %4729 = vmatmul.mubr.msk.f32.vlgmr.msra.gmra.mrb[26].mxu1 %vm1844_vm2, %v1829_v28 }
 0x6aa   :  { %4735 = vmatprep.mubr.msk.f32.mxu1 %vm5598_vm3, %v5599_v5 }
 0x77c   :  { %v4730_v51 = vpop.f32.mrb[26].mxu1 }
 0x77d   :  { %v1923_v52 = vadd.f32 %v4730_v51, %v3789_v50  ;;  %v1917_v53 = vpop.f32.mrb[27].mxu1  ;;  %v2423_v51 = vld [vmem:[%s7275_s14] sm:$0xff] }
 0x77e   :  { %v1918_v54 = vadd.f32 %v3789_v50, %v1917_v53  ;;  %v5311_v50 = vpack.c.bf16 %v3828_v49, %v3827_v48  ;;  %v2425_v53 = vld [vmem:[%s7275_s14 + $0x10] sm:$0xff]  ;;  %v2695_v49 = vld [vmem:[%s7279_s18 + $0xc0] sm:$0xff] }
 0x77f   :  { %v1929_v55 = vmax.f32 %v1923_v52, 0.0  ;;  %v2424_v52 = vld [vmem:[%s7275_s14 + $0x8] sm:$0xff] }
 0x780   :  { %v1928_v56 = vmax.f32 %v1918_v54, 0.0  ;;  %v5314_v54 = vpack.c.bf16 %v2424_v52, %v2423_v51  ;;  %v2672_v52 = vld [vmem:[%s7279_s18 + $0x8] sm:$0xff] }
 0x782   :  { %v6344_v57 = vpack.c.bf16 %v1929_v55, %v1928_v56  ;;  %v2426_v55 = vld [vmem:[%s7275_s14 + $0x18] sm:$0xff] }
 0x783   :  { %v5317_v56 = vpack.c.bf16 %v2426_v55, %v2425_v53  ;;  %v2682_v53 = vld [vmem:[%s7279_s18 + $0x58] sm:$0xff]  ;;  %v2681_v55 = vld [vmem:[%s7279_s18 + $0x50] sm:$0xff] }
 0x784   :  { %5234 = vmatpush3.bf16.msra.mxu1 %v6344_v57 }
 0x785   :  { %5235 = vmatprep.subr.bf16.mxu1 %v5597_v22 }
 0x787   :  { %4736 = vmatmul.mubr.msk.f32.vlgmr.msra.gmra.mrb[28].mxu1 %vm1931_vm4, %v1930_v58  ;;  %v2428_v58 = vld [vmem:[%s7275_s14 + $0x28] sm:$0xff] }
 0x788   :  { %5237 = vmatpush3.bf16.msra.mxu1 %v6344_v57  ;;  %4742 = vmatprep.mubr.msk.f32.mxu1 %vm5598_vm3, %v5599_v5 }
 0x789   :  { %5238 = vmatprep.subr.bf16.mxu1 %v5597_v22 }
 0x78b   :  { %4743 = vmatmul.mubr.msk.f32.vlgmr.msra.gmra.mrb[30].mxu1 %vm1931_vm4, %v3793_v61 }
 0x78c   :  { %5240 = vmatpush3.bf16.msra.mxu1 %v5239_v62  ;;  %4777 = vmatprep.mubr.msk.f32.mxu1 %vm5598_vm3, %v5599_v5 }
 0x78d   :  { %5241 = vmatprep.subr.bf16.mxu1 %v5597_v22 }
 0x790   :  { %5243 = vmatpush3.bf16.msra.mxu1 %v5242_v1 }
 0x791   :  { %5244 = vmatprep.subr.bf16.mxu1 %v5597_v22 }
 0x794   :  { %5246 = vmatpush3.bf16.msra.mxu1 %v5245_v4  ;;  %v2430_v4 = vld [vmem:[%s7275_s14 + $0x38] sm:$0xff] }
 0x795   :  { %5247 = vmatprep.subr.bf16.mxu1 %v5597_v22  ;;  %v5323_v6 = vpack.c.bf16 %v2430_v4, %v2429_v3  ;;  %v2674_v3 = vld [vmem:[%s7279_s18 + $0x18] sm:$0xff]  ;;  %v2684_v4 = vld [vmem:[%s7279_s18 + $0x68] sm:$0xff] }
 0x798   :  { %5249 = vmatpush3.bf16.msra.mxu1 %v5248_v8  ;;  %v2512_v8 = vld [vmem:[%s7278_s17 + $0x8] sm:$0xff] }
 0x799   :  { %5250 = vmatprep.subr.bf16.mxu1 %v5597_v22  ;;  %v5326_v16 = vpack.c.bf16 %v2512_v8, %v2511_v7  ;;  %v5357_v7 = vpack.c.bf16 %v2684_v4, %v2674_v3  ;;  %v2690_v8 = vld [vmem:[%s7279_s18 + $0x98] sm:$0xff] }
 0x79c   :  { %5252 = vmatpush3.bf16.msra.mxu1 %v5251_v11 }
 0x79d   :  { %5253 = vmatprep.subr.bf16.mxu1 %v5597_v22 }
 0x7a0   :  { %5255 = vmatpush3.bf16.msra.mxu1 %v5254_v17 }
 0x7a1   :  { %5256 = vmatprep.subr.bf16.mxu1 %v5597_v22 }
 0x7a4   :  { %5258 = vmatpush3.bf16.msra.mxu1 %v5257_v23  ;;  %v5329_v23 = vpack.c.bf16 %v2514_v20, %v2513_v18  ;;  %v2704_v18 = vld [vmem:[%s7279_s18 + $0x108] sm:$0xff] }
 0x7a5   :  { %5259 = vmatprep.subr.bf16.mxu1 %v5597_v22  ;;  %v2700_v20 = vld [vmem:[%s7279_s18 + $0xe8] sm:$0xff] }
 0x7a8   :  { %5261 = vmatpush3.bf16.msra.mxu1 %v5260_v26  ;;  %v5332_v26 = vpack.c.bf16 %v2516_v25, %v2515_v24 }
 0x7a9   :  { %5286 = vmatprep.subr.bf16.mxu1 %v5597_v22 }
 0x85a   :  { %v2001_v28 = vpop.f32.mrb[28].mxu1 }
 0x85b   :  { %v4737_v15 = vpop.f32.mrb[29].mxu1  ;;  %4813 = vmatmul.mubr.f32.vlgmr.msra.gmra.mrb[18].mxu0 %v2001_v28  ;;  %v2519_v28 = vld [vmem:[%s7278_s17 + $0x40] sm:$0xff] }
 0x85c   :  { %5291 = vmatpush3.bf16.msra.mxu0 %v5290_v27  ;;  %4854 = vmatprep.mubr.msk.f32.mxu0 %vm5598_vm3, %v5599_v5  ;;  %v5335_v27 = vpack.c.bf16 %v2518_v21, %v2517_v14  ;;  %v5338_v13 = vpack.c.bf16 %v2520_v29, %v2519_v28  ;;  %v2521_v15 = vld [vmem:[%s7278_s17 + $0x50] sm:$0xff]  ;;  %v2703_v14 = vld [vmem:[%s7279_s18 + $0x100] sm:$0xff] }
 0x85d   :  { %5292 = vmatprep.subr.bf16.mxu0 %v5597_v22  ;;  %v2699_v28 = vld [vmem:[%s7279_s18 + $0xe0] sm:$0xff]  ;;  %v2709_v29 = vld [vmem:[%s7279_s18 + $0x130] sm:$0xff] }
 0x85e   :  { %v2092_v31 = vpop.f32.mrb[30].mxu1 }
 0x85f   :  { %v4744_v33 = vpop.f32.mrb[31].mxu1  ;;  %4778 = vmatmul.mubr.f32.vlgmr.msra.gmra.mrb[32].mxu1 %v2092_v31 }
 0x860   :  { %5288 = vmatpush3.bf16.msra.mxu1 %v6344_v57  ;;  %4819 = vmatprep.mubr.msk.f32.mxu1 %vm5598_vm3, %v5599_v5  ;;  %v2427_v57 = vld [vmem:[%s7275_s14 + $0x20] sm:$0xff]  ;;  %v5344_v33 = vpack.c.bf16 %v2524_v19, %v2523_v32  ;;  %v3172_v32 = vld [vmem:[%s7281_s20 + $0x188] sm:$0xff] }
 0x861   :  { %5294 = vmatpush3.bf16.msra.mxu0 %v5293_v30  ;;  %5313 = vmatprep.subr.bf16.mxu1 %v5597_v22  ;;  %v5320_v59 = vpack.c.bf16 %v2428_v58, %v2427_v57  ;;  %v2522_v30 = vld [vmem:[%s7278_s17 + $0x58] sm:$0xff]  ;;  %v5349_v58 = vpack.c.bf16 %v2682_v53, %v2672_v52  ;;  %v3157_v52 = vld [vmem:[%s7281_s20 + $0x110] sm:$0xff] }
 0x862   :  { %5295 = vmatprep.subr.bf16.mxu0 %v5597_v22  ;;  %v5341_v31 = vpack.c.bf16 %v2522_v30, %v2521_v15  ;;  %v2702_v57 = vld [vmem:[%s7279_s18 + $0xf8] sm:$0xff]  ;;  %v2688_v30 = vld [vmem:[%s7279_s18 + $0x88] sm:$0xff] }
 0x863   :  { %4820 = vmatmul.mubr.msk.f32.vlgmr.msra.gmra.mrb[34].mxu1 %vm1931_vm4, %v3811_v34  ;;  %v2525_v34 = vld [vmem:[%s7278_s17 + $0x70] sm:$0xff]  ;;  %v3158_v53 = vld [vmem:[%s7281_s20 + $0x118] sm:$0xff] }
 0x864   :  { %4873 = vmatprep.mubr.msk.f32.mxu1 %vm5598_vm3, %v5599_v5  ;;  %5315 = vmatpush3.bf16.msra.mxu1 %v5314_v54  ;;  %v2671_v54 = vld [vmem:[%s7279_s18] sm:$0xff] }
 0x865   :  { %5297 = vmatpush3.bf16.msra.mxu0 %v5296_v35  ;;  %5316 = vmatprep.subr.bf16.mxu1 %v5597_v22  ;;  %v2526_v35 = vld [vmem:[%s7278_s17 + $0x78] sm:$0xff] }
 0x866   :  { %5298 = vmatprep.subr.bf16.mxu0 %v5597_v22  ;;  %v5347_v36 = vpack.c.bf16 %v2526_v35, %v2525_v34  ;;  %v5387_v34 = vpack.c.bf16 %v2709_v29, %v2699_v28  ;;  %v3163_v28 = vld [vmem:[%s7281_s20 + $0x140] sm:$0xff]  ;;  %v3164_v29 = vld [vmem:[%s7281_s20 + $0x148] sm:$0xff] }
 0x868   :  { %5318 = vmatpush3.bf16.msra.mxu1 %v5317_v56  ;;  %v2692_v56 = vld [vmem:[%s7279_s18 + $0xa8] sm:$0xff] }
 0x869   :  { %5300 = vmatpush3.bf16.msra.mxu0 %v5299_v38  ;;  %5319 = vmatprep.subr.bf16.mxu1 %v5597_v22 }
 0x86a   :  { %5301 = vmatprep.subr.bf16.mxu0 %v5597_v22 }
 0x86c   :  { %5321 = vmatpush3.bf16.msra.mxu1 %v5320_v59  ;;  %v2510_v59 = vld [vmem:[%s7277_s16] sm:$0x3] }
 0x86d   :  { %5303 = vmatpush3.bf16.msra.mxu0 %v5302_v41  ;;  %5322 = vmatprep.subr.bf16.mxu1 %v5597_v22  ;;  %v2686_v41 = vld [vmem:[%s7279_s18 + $0x78] sm:$0xff] }
 0x86e   :  { %5304 = vmatprep.subr.bf16.mxu0 %v5597_v22 }
 0x870   :  { %5324 = vmatpush3.bf16.msra.mxu1 %v5323_v6  ;;  %v2680_v6 = vld [vmem:[%s7279_s18 + $0x48] sm:$0xff] }
 0x871   :  { %5306 = vmatpush3.bf16.msra.mxu0 %v5305_v44  ;;  %5325 = vmatprep.subr.bf16.mxu1 %v5597_v22  ;;  %v2685_v44 = vld [vmem:[%s7279_s18 + $0x70] sm:$0xff] }
 0x872   :  { %5307 = vmatprep.subr.bf16.mxu0 %v5597_v22  ;;  %v5367_v45 = vpack.c.bf16 %v2685_v44, %v2675_v43  ;;  %v3174_v43 = vld [vmem:[%s7281_s20 + $0x198] sm:$0xff] }
 0x875   :  { %5309 = vmatpush3.bf16.msra.mxu0 %v5308_v47  ;;  %v2706_v47 = vld [vmem:[%s7279_s18 + $0x118] sm:$0xff] }
 0x876   :  { %5310 = vmatprep.subr.bf16.mxu0 %v5597_v22  ;;  %v5369_v48 = vpack.c.bf16 %v2706_v47, %v2696_v46  ;;  %v2697_v46 = vld [vmem:[%s7279_s18 + $0xd0] sm:$0xff]  ;;  %v2707_v47 = vld [vmem:[%s7279_s18 + $0x120] sm:$0xff] }
 0x879   :  { %5312 = vmatpush3.bf16.msra.mxu0 %v5311_v50  ;;  %v2705_v50 = vld [vmem:[%s7279_s18 + $0x110] sm:$0xff] }
 0x87a   :  { %4911 = vmatprep.subr.mxu0 %v5599_v5  ;;  %v5371_v51 = vpack.c.bf16 %v2705_v50, %v2695_v49  ;;  %v3140_v50 = vld [vmem:[%s7281_s20 + $0x88] sm:$0xff] }
 0x92e   :  { %v2249_v60 = vpop.f32.mrb[18].mxu0 }
 0x92f   :  { %v4814_v61 = vpop.f32.mrb[19].mxu0 }
 0x932   :  { %v2179_v62 = vpop.f32.mrb[32].mxu1 }
 0x933   :  { %v2250_v63 = vadd.f32 %v2249_v60, %v2179_v62  ;;  %v4779_v0 = vpop.f32.mrb[33].mxu1  ;;  %v5351_v60 = vpack.c.bf16 %v2681_v55, %v2671_v54  ;;  %v5353_v62 = vpack.c.bf16 %v2702_v57, %v2692_v56  ;;  %v3175_v54 = vld [vmem:[%s7281_s20 + $0x1a0] sm:$0xff]  ;;  %v3176_v55 = vld [vmem:[%s7281_s20 + $0x1a8] sm:$0xff]  ;;  %v5379_v56 = vpack.c.bf16 %v2707_v47, %v2697_v46 }
 0x934   :  { %v2701_v0 = vld [vmem:[%s7279_s18 + $0xf0] sm:$0xff]  ;;  %v3151_v46 = vld [vmem:[%s7281_s20 + $0xe0] sm:$0xff]  ;;  %v3152_v47 = vld [vmem:[%s7281_s20 + $0xe8] sm:$0xff] }
 0x936   :  { %v2324_v1 = vpop.f32.mrb[34].mxu1 }
 0x937   :  { %v4821_v2 = vpop.f32.mrb[35].mxu1  ;;  %4855 = vmatmul.mubr.f32.vlgmr.msra.gmra.mrb[20].mxu0 %v2324_v1 }
 0x938   :  { %4913 = vmatprep.mubr.msk.f32.mxu0 %vm5598_vm3, %v5599_v5 }
 0xa0a   :  { %v2411_v10 = vpop.f32.mrb[20].mxu0 }
 0xa0b   :  { %v2415_v11 = vadd.f32 %v2411_v10, %v2250_v63  ;;  %v4856_v12 = vpop.f32.mrb[21].mxu0  ;;  %v2691_v63 = vld [vmem:[%s7279_s18 + $0xa0] sm:$0xff]  ;;  %v2673_v10 = vld [vmem:[%s7279_s18 + $0x10] sm:$0xff] }
 0xa0c   :  { %v5355_v2 = vpack.c.bf16 %v2701_v0, %v2691_v63  ;;  %v2679_v12 = vld [vmem:[%s7279_s18 + $0x40] sm:$0xff]  ;;  %v3160_v0 = vld [vmem:[%s7281_s20 + $0x128] sm:$0xff] }
 0xa0d   :  { %v2422_v17 = vadd.f32 %v3829_v9, %v2415_v11  ;;  %v5381_v9 = vpack.c.bf16 %v2690_v8, %v2680_v6  ;;  %v2683_v11 = vld [vmem:[%s7279_s18 + $0x60] sm:$0xff]  ;;  %v3125_v6 = vld [vmem:[%s7281_s20 + $0x10] sm:$0xff] }
 0xa0e   :  { %v5359_v24 = vpack.c.bf16 %v2683_v11, %v2673_v10  ;;  %v3159_v63 = vld [vmem:[%s7281_s20 + $0x120] sm:$0xff]  ;;  %v3144_v10 = vld [vmem:[%s7281_s20 + $0xa8] sm:$0xff] }
 0xa0f   :  { %4874 = vmatmul.mubr.msk.f32.vlgmr.msra.gmra.mrb[36].mxu1 %vm1844_vm2, %v2422_v17  ;;  %v2694_v17 = vld [vmem:[%s7279_s18 + $0xb8] sm:$0xff]  ;;  %v3143_v8 = vld [vmem:[%s7281_s20 + $0xa0] sm:$0xff] }
 0xa10   :  { %5327 = vmatpush3.bf16.msra.mxu1 %v5326_v16  ;;  %4908 = vmatprep.mubr.msk.f32.mxu1 %vm5598_vm3, %v5599_v5  ;;  %v2689_v16 = vld [vmem:[%s7279_s18 + $0x90] sm:$0xff]  ;;  %v5361_v21 = vpack.c.bf16 %v2704_v18, %v2694_v17  ;;  %v3179_v17 = vld [vmem:[%s7281_s20 + $0x1c0] sm:$0xff]  ;;  %v3180_v18 = vld [vmem:[%s7281_s20 + $0x1c8] sm:$0xff] }
 0xa11   :  { %5328 = vmatprep.subr.bf16.mxu1 %v5597_v22  ;;  %v5383_v25 = vpack.c.bf16 %v2689_v16, %v2679_v12  ;;  %v3161_v12 = vld [vmem:[%s7281_s20 + $0x130] sm:$0xff]  ;;  %v3162_v16 = vld [vmem:[%s7281_s20 + $0x138] sm:$0xff] }
 0xa14   :  { %5330 = vmatpush3.bf16.msra.mxu1 %v5329_v23  ;;  %v2710_v23 = vld [vmem:[%s7279_s18 + $0x138] sm:$0xff] }
 0xa15   :  { %5331 = vmatprep.subr.bf16.mxu1 %v5597_v22 }
 0xa18   :  { %5333 = vmatpush3.bf16.msra.mxu1 %v5332_v26  ;;  %v2693_v26 = vld [vmem:[%s7279_s18 + $0xb0] sm:$0xff] }
 0xa19   :  { %5334 = vmatprep.subr.bf16.mxu1 %v5597_v22 }
 0xa1c   :  { %5336 = vmatpush3.bf16.msra.mxu1 %v5335_v27  ;;  %v5385_v27 = vpack.c.bf16 %v2710_v23, %v2700_v20  ;;  %v5397_v23 = vpack.c.bf16 %v3144_v10, %v3143_v8  ;;  %v3186_v8 = vld [vmem:[%s7281_s20 + $0x1f8] sm:$0xff]  ;;  %v3169_v10 = vld [vmem:[%s7281_s20 + $0x170] sm:$0xff] }
 0xa1d   :  { %5337 = vmatprep.subr.bf16.mxu1 %v5597_v22 }
 0xa20   :  { %5339 = vmatpush3.bf16.msra.mxu1 %v5338_v13  ;;  %v2678_v13 = vld [vmem:[%s7279_s18 + $0x38] sm:$0xff] }
 0xa21   :  { %5340 = vmatprep.subr.bf16.mxu1 %v5597_v22  ;;  %v5373_v35 = vpack.c.bf16 %v2688_v30, %v2678_v13  ;;  %v3181_v13 = vld [vmem:[%s7281_s20 + $0x1d0] sm:$0xff] }
 0xa24   :  { %5342 = vmatpush3.bf16.msra.mxu1 %v5341_v31  ;;  %v3171_v31 = vld [vmem:[%s7281_s20 + $0x180] sm:$0xff] }
 0xa25   :  { %5343 = vmatprep.subr.bf16.mxu1 %v5597_v22 }
 0xa28   :  { %5345 = vmatpush3.bf16.msra.mxu1 %v5344_v33  ;;  %v5363_v33 = vpack.c.bf16 %v2703_v14, %v2693_v26  ;;  %v3145_v26 = vld [vmem:[%s7281_s20 + $0xb0] sm:$0xff]  ;;  %v5435_v14 = vpack.c.bf16 %v3162_v16, %v3161_v12  ;;  %v3235_v16 = vld [vmem:[%s7281_s20 + $0x380] sm:$0xff] }
 0xa29   :  { %5346 = vmatprep.subr.bf16.mxu1 %v5597_v22  ;;  %v2676_v22 = vld [vmem:[%s7279_s18 + $0x28] sm:$0xff] }
 0xa2a   :  { %v5365_v42 = vpack.c.bf16 %v2686_v41, %v2676_v22  ;;  %v3155_v22 = vld [vmem:[%s7281_s20 + $0x100] sm:$0xff]  ;;  %v3156_v41 = vld [vmem:[%s7281_s20 + $0x108] sm:$0xff] }
 0xa2b   :  { %v5423_v49 = vpack.c.bf16 %v3156_v41, %v3155_v22  ;;  %v3149_v22 = vld [vmem:[%s7281_s20 + $0xd0] sm:$0xff]  ;;  %v3150_v41 = vld [vmem:[%s7281_s20 + $0xd8] sm:$0xff] }
 0xa2c   :  { %5348 = vmatpush3.bf16.msra.mxu1 %v5347_v36  ;;  %v2677_v36 = vld [vmem:[%s7279_s18 + $0x30] sm:$0xff] }
 0xa2d   :  { %5366 = vmatprep.subr.bf16.mxu1 %v5365_v42  ;;  %v3173_v42 = vld [vmem:[%s7281_s20 + $0x190] sm:$0xff] }
 0xae2   :  { %v2506_v38 = vpop.f32.mrb[36].mxu1 }
 0xae3   :  { %v2507_v39 = vadd.f32 %v3830_v37, %v2506_v38  ;;  %v4875_v40 = vpop.f32.mrb[37].mxu1  ;;  %v2687_v37 = vld [vmem:[%s7279_s18 + $0x80] sm:$0xff]  ;;  %v2698_v38 = vld [vmem:[%s7279_s18 + $0xd8] sm:$0xff] }
 0xae4   :  { %v2708_v40 = vld [vmem:[%s7279_s18 + $0x128] sm:$0xff]  ;;  %v5375_v44 = vpack.c.bf16 %v2687_v37, %v2677_v36 }
 0xae5   :  { %4909 = vmatmul.mubr.f32.vlgmr.msra.gmra.mrb[38].mxu1 %v2507_v39  ;;  %v5421_v39 = vpack.c.bf16 %v3172_v32, %v3171_v31  ;;  %v3129_v32 = vld [vmem:[%s7281_s20 + $0x30] sm:$0xff] }
 0xae6   :  { %2974 = vmatprep.mubr.f32.mxu1 %v5599_v5  ;;  %5368 = vmatpush1.bf16.msra.mxu1 %v5367_v45  ;;  %v5377_v45 = vpack.c.bf16 %v2708_v40, %v2698_v38  ;;  %v3132_v40 = vld [vmem:[%s7281_s20 + $0x48] sm:$0xff] }
 0xae7   :  { %5370 = vmatprep.subr.bf16.mxu1 %v5369_v48  ;;  %v3139_v48 = vld [vmem:[%s7281_s20 + $0x80] sm:$0xff] }
 0xae8   :  { %v5389_v57 = vpack.c.bf16 %v3140_v50, %v3139_v48  ;;  %v3135_v50 = vld [vmem:[%s7281_s20 + $0x60] sm:$0xff] }
 0xaea   :  { %5372 = vmatpush1.bf16.msra.mxu1 %v5371_v51  ;;  %v5425_v51 = vpack.c.bf16 %v3174_v43, %v3173_v42  ;;  %v5409_v43 = vpack.c.bf16 %v3150_v41, %v3149_v22  ;;  %v3189_v22 = vld [vmem:[%s7281_s20 + $0x210] sm:$0xff]  ;;  %v3190_v41 = vld [vmem:[%s7281_s20 + $0x218] sm:$0xff] }
 0xaeb   :  { %5382 = vmatprep.subr.bf16.mxu1 %v5381_v9  ;;  %v5431_v9 = vpack.c.bf16 %v3160_v0, %v3159_v63  ;;  %v3167_v0 = vld [vmem:[%s7281_s20 + $0x160] sm:$0xff] }
 0xbb8   :  { %v2593_v61 = vpop.f32.mrb[38].mxu1 }
 0xbb9   :  { %v4910_v1 = vpop.f32.mrb[39].mxu1  ;;  %4912 = vmatpush3.msra.mxu0 %v2593_v61  ;;  %v5427_v61 = vpack.c.bf16 %v3158_v53, %v3157_v52  ;;  %v3153_v53 = vld [vmem:[%s7281_s20 + $0xf0] sm:$0xff] }
 0xbba   :  { %4914 = vmatmul.mubr.msk.f32.vlgmr.msra.gmra.mrb[22].mxu0 %vm2597_vm5, %v2510_v59  ;;  %5350 = vmatprep.subr.bf16.mxu0 %v5349_v58  ;;  %v3123_v58 = vld [vmem:[%s7281_s20] sm:$0xff]  ;;  %v3124_v59 = vld [vmem:[%s7281_s20 + $0x8] sm:$0xff]  ;;  %v3177_v1 = vld [vmem:[%s7281_s20 + $0x1b0] sm:$0xff] }
 0xbbb   :  { %5352 = vmatpush1.bf16.msra.mxu0 %v5351_v60  ;;  %2832 = vmatprep.mubr.f32.mxu0 %v5599_v5  ;;  %v3141_v60 = vld [vmem:[%s7281_s20 + $0x90] sm:$0xff]  ;;  %v5391_v3 = vpack.c.bf16 %v3124_v59, %v3123_v58  ;;  %v3138_v59 = vld [vmem:[%s7281_s20 + $0x78] sm:$0xff] }
 0xbbc   :  { %5354 = vmatprep.subr.bf16.mxu0 %v5353_v62  ;;  %v5429_v62 = vpack.c.bf16 %v3176_v55, %v3175_v54  ;;  %v3154_v54 = vld [vmem:[%s7281_s20 + $0xf8] sm:$0xff]  ;;  %v3165_v55 = vld [vmem:[%s7281_s20 + $0x150] sm:$0xff] }
 0xbbd   :  { %v3137_v58 = vld [vmem:[%s7281_s20 + $0x70] sm:$0xff] }
 0xbbf   :  { %5356 = vmatpush1.bf16.msra.mxu0 %v5355_v2  ;;  %v3178_v2 = vld [vmem:[%s7281_s20 + $0x1b8] sm:$0xff] }
 0xbc0   :  { %5358 = vmatprep.subr.bf16.mxu0 %v5357_v7  ;;  %v3126_v7 = vld [vmem:[%s7281_s20 + $0x18] sm:$0xff]  ;;  %v5433_v11 = vpack.c.bf16 %v3178_v2, %v3177_v1  ;;  %v3168_v1 = vld [vmem:[%s7281_s20 + $0x168] sm:$0xff]  ;;  %v3203_v2 = vld [vmem:[%s7281_s20 + $0x280] sm:$0xff] }
 0xbc1   :  { %v5395_v20 = vpack.c.bf16 %v3126_v7, %v3125_v6  ;;  %v3185_v7 = vld [vmem:[%s7281_s20 + $0x1f0] sm:$0xff] }
 0xc8d   :  { %v6684_v15 = vpop.f32.mrb[22].mxu0 }
 0xc8e   :  { %3833 = vmatmul.mubr.msk.f32.vlgmr.msra.gmra.mrb[24].mxu0 %vm81_vm0, %v6684_v15  ;;  %3835 = vmatmul.mubr.msk.f32.vlgmr.msra.gmra.mrb[40].mxu1 %vm81_vm0, %v6684_v15  ;;  %v4915_v19 = vpop.f32.mrb[23].mxu0 }
 0xc8f   :  { %5360 = vmatpush1.bf16.msra.mxu0 %v5359_v24  ;;  %5384 = vmatpush1.bf16.msra.mxu1 %v5383_v25  ;;  %v3127_v24 = vld [vmem:[%s7281_s20 + $0x20] sm:$0xff]  ;;  %v3128_v25 = vld [vmem:[%s7281_s20 + $0x28] sm:$0xff]  ;;  %v3130_v19 = vld [vmem:[%s7281_s20 + $0x38] sm:$0xff] }
 0xc90   :  { %5362 = vmatprep.subr.bf16.mxu0 %v5361_v21  ;;  %5386 = vmatprep.subr.bf16.mxu1 %v5385_v27  ;;  %v3146_v21 = vld [vmem:[%s7281_s20 + $0xb8] sm:$0xff]  ;;  %v5437_v27 = vpack.c.bf16 %v3180_v18, %v3179_v17  ;;  %v5399_v30 = vpack.c.bf16 %v3128_v25, %v3127_v24  ;;  %v5403_v37 = vpack.c.bf16 %v3130_v19, %v3129_v32  ;;  %v3236_v17 = vld [vmem:[%s7281_s20 + $0x388] sm:$0xff]  ;;  %v6930_v25 = vld [vmem:[%s7280_s19] sm:$0xff] }
 0xc91   :  { %2903 = vmatprep.mubr.f32.mxu0 %v5599_v5  ;;  %3116 = vmatprep.mubr.f32.mxu1 %v5599_v5  ;;  %v5401_v31 = vpack.c.bf16 %v3146_v21, %v3145_v26  ;;  %v5485_v18 = vpack.c.bf16 %v3236_v17, %v3235_v16  ;;  %v3206_v32 = vld [vmem:[%s7281_s20 + $0x298] sm:$0xff]  ;;  %v3212_v16 = vld [vmem:[%s7281_s20 + $0x2c8] sm:$0xff] }
 0xc93   :  { %5364 = vmatpush1.bf16.msra.mxu0 %v5363_v33  ;;  %5388 = vmatpush1.bf16.msra.mxu1 %v5387_v34  ;;  %v5439_v33 = vpack.c.bf16 %v3164_v29, %v3163_v28  ;;  %v3147_v34 = vld [vmem:[%s7281_s20 + $0xc0] sm:$0xff]  ;;  %v3188_v29 = vld [vmem:[%s7281_s20 + $0x208] sm:$0xff] }
 0xc94   :  { %5374 = vmatprep.subr.bf16.mxu0 %v5373_v35  ;;  %5422 = vmatprep.subr.bf16.mxu1 %v5421_v39  ;;  %v3148_v35 = vld [vmem:[%s7281_s20 + $0xc8] sm:$0xff]  ;;  %v3131_v39 = vld [vmem:[%s7281_s20 + $0x40] sm:$0xff] }
 0xc95   :  { %v5405_v38 = vpack.c.bf16 %v3148_v35, %v3147_v34  ;;  %v5407_v42 = vpack.c.bf16 %v3132_v40, %v3131_v39  ;;  %v3187_v28 = vld [vmem:[%s7281_s20 + $0x200] sm:$0xff] }
 0xc96   :  { %3834 = vmatmul.mubr.msk.f32.vlgmr.msra.gmra.mrb[26].mxu0 %vm81_vm0, %v6684_v15  ;;  %3837 = vmatmul.mubr.msk.f32.vlgmr.msra.gmra.mrb[42].mxu1 %vm81_vm0, %v6684_v15  ;;  %v5455_v35 = vpack.c.bf16 %v3188_v29, %v3187_v28  ;;  %v3195_v28 = vld [vmem:[%s7281_s20 + $0x240] sm:$0xff]  ;;  %v3196_v29 = vld [vmem:[%s7281_s20 + $0x248] sm:$0xff] }
 0xc97   :  { %5376 = vmatpush1.bf16.msra.mxu0 %v5375_v44  ;;  %3045 = vmatprep.mubr.f32.mxu0 %v5599_v5  ;;  %v3142_v5 = vld [vmem:[%s7281_s20 + $0x98] sm:$0xff]  ;;  %v3133_v44 = vld [vmem:[%s7281_s20 + $0x50] sm:$0xff] }
 0xc98   :  { %5378 = vmatprep.subr.bf16.mxu0 %v5377_v45  ;;  %5424 = vmatpush3.bf16.msra.mxu1 %v5423_v49  ;;  %v5393_v4 = vpack.c.bf16 %v3142_v5, %v3141_v60  ;;  %v3134_v45 = vld [vmem:[%s7281_s20 + $0x58] sm:$0xff]  ;;  %v5413_v49 = vpack.c.bf16 %v3152_v47, %v3151_v46  ;;  %v3183_v5 = vld [vmem:[%s7281_s20 + $0x1e0] sm:$0xff]  ;;  %v5459_v47 = vpack.c.bf16 %v3190_v41, %v3189_v22  ;;  %v3197_v41 = vld [vmem:[%s7281_s20 + $0x250] sm:$0xff] }
 0xc99   :  { %5426 = vmatprep.subr.bf16.mxu1 %v5425_v51  ;;  %v5411_v48 = vpack.c.bf16 %v3134_v45, %v3133_v44  ;;  %v3136_v51 = vld [vmem:[%s7281_s20 + $0x68] sm:$0xff] }
 0xc9a   :  { %v5415_v52 = vpack.c.bf16 %v3136_v51, %v3135_v50  ;;  %v3208_v44 = vld [vmem:[%s7281_s20 + $0x2a8] sm:$0xff] }
 0xc9b   :  { %5380 = vmatpush1.bf16.msra.mxu0 %v5379_v56  ;;  %v5417_v56 = vpack.c.bf16 %v3154_v54, %v3153_v53  ;;  %v3192_v53 = vld [vmem:[%s7281_s20 + $0x228] sm:$0xff]  ;;  %v3237_v54 = vld [vmem:[%s7281_s20 + $0x390] sm:$0xff] }
 0xc9c   :  { %5390 = vmatprep.subr.bf16.mxu0 %v5389_v57  ;;  %5428 = vmatpush3.bf16.msra.mxu1 %v5427_v61  ;;  %v3166_v57 = vld [vmem:[%s7281_s20 + $0x158] sm:$0xff]  ;;  %v5419_v61 = vpack.c.bf16 %v3138_v59, %v3137_v58  ;;  %v3209_v58 = vld [vmem:[%s7281_s20 + $0x2b0] sm:$0xff] }
 0xc9d   :  { %5430 = vmatprep.subr.bf16.mxu1 %v5429_v62  ;;  %v5443_v60 = vpack.c.bf16 %v3166_v57, %v3165_v55  ;;  %v3184_v62 = vld [vmem:[%s7281_s20 + $0x1e8] sm:$0xff]  ;;  %v3238_v57 = vld [vmem:[%s7281_s20 + $0x398] sm:$0xff] }
 0xc9e   :  { %3836 = vmatmul.mubr.msk.f32.vlgmr.msra.gmra.mrb[28].mxu0 %vm81_vm0, %v6684_v15  ;;  %v3182_v15 = vld [vmem:[%s7281_s20 + $0x1d8] sm:$0xff]  ;;  %v5445_v63 = vpack.c.bf16 %v3184_v62, %v3183_v5 }
 0xc9f   :  { %5392 = vmatpush3.bf16.msra.mxu0 %v5391_v3  ;;  %v5441_v36 = vpack.c.bf16 %v3182_v15, %v3181_v13  ;;  %v5447_v3 = vpack.c.bf16 %v3168_v1, %v3167_v0  ;;  %v3210_v59 = vld [vmem:[%s7281_s20 + $0x2b8] sm:$0xff] }
 0xca0   :  { %5394 = vmatprep.subr.bf16.mxu0 %v5393_v4  ;;  %5432 = vmatpush3.bf16.msra.mxu1 %v5431_v9  ;;  %v3204_v4 = vld [vmem:[%s7281_s20 + $0x288] sm:$0xff]  ;;  %v5449_v9 = vpack.c.bf16 %v3186_v8, %v3185_v7  ;;  %v5465_v7 = vpack.c.bf16 %v3210_v59, %v3209_v58  ;;  %v3193_v8 = vld [vmem:[%s7281_s20 + $0x230] sm:$0xff]  ;;  %v3218_v58 = vld [vmem:[%s7281_s20 + $0x2f8] sm:$0xff] }
 0xca1   :  { %5434 = vmatprep.subr.bf16.mxu1 %v5433_v11  ;;  %v5453_v6 = vpack.c.bf16 %v3204_v4, %v3203_v2  ;;  %v3170_v11 = vld [vmem:[%s7281_s20 + $0x178] sm:$0xff]  ;;  %v3221_v2 = vld [vmem:[%s7281_s20 + $0x310] sm:$0xff] }
 0xca2   :  { %v5451_v12 = vpack.c.bf16 %v3170_v11, %v3169_v10  ;;  %v3239_v10 = vld [vmem:[%s7281_s20 + $0x3a0] sm:$0xff]  ;;  %v3240_v11 = vld [vmem:[%s7281_s20 + $0x3a8] sm:$0xff] }
 0xca3   :  { %5396 = vmatpush3.bf16.msra.mxu0 %v5395_v20  ;;  %v2715_v20 = vlaneseq }
 0xca4   :  { %5398 = vmatprep.subr.bf16.mxu0 %v5397_v23  ;;  %5436 = vmatpush3.bf16.msra.mxu1 %v5435_v14 }
 0xca5   :  { %5438 = vmatprep.subr.bf16.mxu1 %v5437_v27  ;;  %v6924_v23 = vshrl.u32 %v2715_v20, 7 }
 0xca7   :  { %5400 = vmatpush3.bf16.msra.mxu0 %v5399_v30  ;;  %v2721_v24 = vsub.s32 1, %v6924_v23  ;;  %v2717_v26 = vsub.s32 0, %v6924_v23  ;;  %v2737_v14 = vsub.s32 5, %v6924_v23  ;;  %v2725_v39 = vsub.s32 2, %v6924_v23 }
 0xca8   :  { %5402 = vmatprep.subr.bf16.mxu0 %v5401_v31  ;;  %5440 = vmatpush3.bf16.msra.mxu1 %v5439_v33  ;;  %v3205_v31 = vld [vmem:[%s7281_s20 + $0x290] sm:$0xff]  ;;  %v2745_v1 = vsub.s32 7, %v6924_v23 }
 0xca9   :  { %5442 = vmatprep.subr.bf16.mxu1 %v5441_v36  ;;  %v2722_v21 = vrot.slane %v6930_v25, %v2721_v24  ;;  %v2718_v27 = vrot.slane %v6930_v25, %v2717_v26  ;;  %v2738_v30 = vrot.slane %v6930_v25, %v2737_v14  ;;  %v6956_v36 = vld [vmem:[%s7280_s19 + $0x8] sm:$0x3]  ;;  %v5457_v40 = vpack.c.bf16 %v3206_v32, %v3205_v31  ;;  %v3242_v31 = vld [vmem:[%s7281_s20 + $0x3b8] sm:$0xff]  ;;  %v3213_v32 = vld [vmem:[%s7281_s20 + $0x2d0] sm:$0xff] }
 0xcaa   :  { %v2750_v45 = vrot.slane %v6956_v36, %v2717_v26  ;;  %v2726_v50 = vrot.slane %v6930_v25, %v2725_v39  ;;  %v2746_v17 = vrot.slane %v6930_v25, %v2745_v1  ;;  %v3223_v26 = vld [vmem:[%s7281_s20 + $0x320] sm:$0xff]  ;;  %v3224_v14 = vld [vmem:[%s7281_s20 + $0x328] sm:$0xff]  ;;  %v3226_v39 = vld [vmem:[%s7281_s20 + $0x338] sm:$0xff] }
 0xcab   :  { %5404 = vmatpush3.bf16.msra.mxu0 %v5403_v37  ;;  %v2729_v37 = vsub.s32 3, %v6924_v23 }
 0xcac   :  { %5406 = vmatprep.subr.bf16.mxu0 %v5405_v38  ;;  %5444 = vmatpush3.bf16.msra.mxu1 %v5443_v60 }
 0xcad   :  { %5446 = vmatprep.subr.bf16.mxu1 %v5445_v63  ;;  %v2730_v46 = vrot.slane %v6930_v25, %v2729_v37  ;;  %v5471_v37 = vpack.c.bf16 %v3196_v29, %v3195_v28  ;;  %v2754_v28 = vrot.slane %v6956_v36, %v2721_v24  ;;  %v3269_v29 = vld [vmem:[%s7281_s20 + $0x490] sm:$0xff]  ;;  %v2741_v24 = vsub.s32 6, %v6924_v23 }
 0xcaf   :  { %5408 = vmatpush3.bf16.msra.mxu0 %v5407_v42 }
 0xcb0   :  { %5410 = vmatprep.subr.bf16.mxu0 %v5409_v43  ;;  %5448 = vmatpush3.bf16.msra.mxu1 %v5447_v3  ;;  %v3207_v43 = vld [vmem:[%s7281_s20 + $0x2a0] sm:$0xff]  ;;  %v3222_v3 = vld [vmem:[%s7281_s20 + $0x318] sm:$0xff] }
 0xcb1   :  { %5450 = vmatprep.subr.bf16.mxu1 %v5449_v9  ;;  %v5461_v51 = vpack.c.bf16 %v3208_v44, %v3207_v43  ;;  %v3194_v9 = vld [vmem:[%s7281_s20 + $0x238] sm:$0xff]  ;;  %v3243_v43 = vld [vmem:[%s7281_s20 + $0x3c0] sm:$0xff]  ;;  %v3244_v44 = vld [vmem:[%s7281_s20 + $0x3c8] sm:$0xff] }
 0xcb2   :  { %v5467_v20 = vpack.c.bf16 %v3194_v9, %v3193_v8  ;;  %v3267_v8 = vld [vmem:[%s7281_s20 + $0x480] sm:$0xff]  ;;  %v3268_v9 = vld [vmem:[%s7281_s20 + $0x488] sm:$0xff] }
 0xcb3   :  { %5412 = vmatpush3.bf16.msra.mxu0 %v5411_v48  ;;  %v3219_v48 = vld [vmem:[%s7281_s20 + $0x300] sm:$0xff] }
 0xcb4   :  { %5414 = vmatprep.subr.bf16.mxu0 %v5413_v49  ;;  %5452 = vmatpush3.bf16.msra.mxu1 %v5451_v12  ;;  %v3220_v49 = vld [vmem:[%s7281_s20 + $0x308] sm:$0xff]  ;;  %v3211_v12 = vld [vmem:[%s7281_s20 + $0x2c0] sm:$0xff] }
 0xcb5   :  { %5486 = vmatprep.subr.bf16.mxu1 %v5485_v18  ;;  %v5487_v63 = vpack.c.bf16 %v3220_v49, %v3219_v48  ;;  %v5491_v18 = vpack.c.bf16 %v3222_v3, %v3221_v2  ;;  %v3227_v49 = vld [vmem:[%s7281_s20 + $0x340] sm:$0xff]  ;;  %v3201_v3 = vld [vmem:[%s7281_s20 + $0x270] sm:$0xff] }
 0xcb7   :  { %5416 = vmatpush3.bf16.msra.mxu0 %v5415_v52  ;;  %v3191_v52 = vld [vmem:[%s7281_s20 + $0x220] sm:$0xff] }
 0xcb8   :  { %5418 = vmatprep.subr.bf16.mxu0 %v5417_v56  ;;  %v5463_v0 = vpack.c.bf16 %v3192_v53, %v3191_v52  ;;  %v3199_v53 = vld [vmem:[%s7281_s20 + $0x260] sm:$0xff] }
 0xcbb   :  { %5420 = vmatpush3.bf16.msra.mxu0 %v5419_v61 }
 0xcbc   :  { %5454 = vmatprep.subr.bf16.mxu0 %v5453_v6  ;;  %v5489_v6 = vpack.c.bf16 %v3238_v57, %v3237_v54  ;;  %v3200_v54 = vld [vmem:[%s7281_s20 + $0x268] sm:$0xff]  ;;  %v3217_v57 = vld [vmem:[%s7281_s20 + $0x2f0] sm:$0xff] }
 0xcbd   :  { %v5481_v2 = vpack.c.bf16 %v3218_v58, %v3217_v57 }
 0xd61   :  { %v2834_v13 = vpop.f32.mrb[24].mxu0  ;;  %v6944_v15 = vpop.f32.mrb[40].mxu1 }
 0xd62   :  { %v2836_v19 = vpop.f32.mrb[25].mxu0  ;;  %v2978_v33 = vpop.f32.mrb[41].mxu1  ;;  %v2835_v38 = vadd.f32 %v2834_v13, %v2718_v27  ;;  %v5469_v27 = vpack.c.bf16 %v3212_v16, %v3211_v12  ;;  %v3241_v13 = vld [vmem:[%s7281_s20 + $0x3b0] sm:$0xff]  ;;  %v3231_v12 = vld [vmem:[%s7281_s20 + $0x360] sm:$0xff] }
 0xd63   :  { %v2837_v34 = vadd.f32 %v2836_v19, %v2722_v21  ;;  %v2979_v42 = vadd.f32 %v2978_v33, %v2738_v30  ;;  %v5493_v21 = vpack.c.bf16 %v3240_v11, %v3239_v10  ;;  %v3214_v19 = vld [vmem:[%s7281_s20 + $0x2d8] sm:$0xff] }
 0xd64   :  { %v5473_v22 = vpack.c.bf16 %v3214_v19, %v3213_v32  ;;  %v3233_v19 = vld [vmem:[%s7281_s20 + $0x370] sm:$0xff] }
 0xd65   :  { %3354 = vmatprep.mubr.f32.mxu0 %v2837_v34 }
 0xd66   :  { %3355 = vmatmul.mubr.f32.vlgmr.msra.gmra.mrb[30].mxu0 %v2835_v38  ;;  %v3225_v38 = vld [vmem:[%s7281_s20 + $0x330] sm:$0xff] }
 0xd67   :  { %5456 = vmatpush3.bf16.msra.mxu0 %v5455_v35  ;;  %3494 = vmatprep.mubr.f32.mxu0 %v2979_v42  ;;  %v5495_v35 = vpack.c.bf16 %v3224_v14, %v3223_v26  ;;  %v3198_v42 = vld [vmem:[%s7281_s20 + $0x258] sm:$0xff]  ;;  %v3251_v26 = vld [vmem:[%s7281_s20 + $0x400] sm:$0xff]  ;;  %v3252_v14 = vld [vmem:[%s7281_s20 + $0x408] sm:$0xff] }
 0xd68   :  { %5458 = vmatprep.subr.bf16.mxu0 %v5457_v40  ;;  %v5497_v40 = vpack.c.bf16 %v3242_v31, %v3241_v13  ;;  %v5475_v48 = vpack.c.bf16 %v3198_v42, %v3197_v41  ;;  %v3270_v13 = vld [vmem:[%s7281_s20 + $0x498] sm:$0xff]  ;;  %v5519_v32 = vpack.c.bf16 %v3252_v14, %v3251_v26  ;;  %v2742_v41 = vrot.slane %v6930_v25, %v2741_v24 }
 0xd69   :  { %v2905_v55 = vpop.f32.mrb[26].mxu0  ;;  %v3118_v56 = vpop.f32.mrb[42].mxu1 }
 0xd6a   :  { %v6999_v60 = vadd.f32 %v3118_v56, %v2750_v45  ;;  %v2907_v61 = vpop.f32.mrb[27].mxu0  ;;  %v7001_v5 = vpop.f32.mrb[43].mxu1  ;;  %v2906_v4 = vadd.f32 %v2905_v55, %v2726_v50  ;;  %v3215_v45 = vld [vmem:[%s7281_s20 + $0x2e0] sm:$0xff]  ;;  %v3228_v50 = vld [vmem:[%s7281_s20 + $0x348] sm:$0xff]  ;;  %v3245_v55 = vld [vmem:[%s7281_s20 + $0x3d0] sm:$0xff] }
 0xd6b   :  { %v2908_v62 = vadd.f32 %v2907_v61, %v2730_v46  ;;  %5460 = vmatpush3.bf16.msra.mxu0 %v5459_v47  ;;  %v3216_v46 = vld [vmem:[%s7281_s20 + $0x2e8] sm:$0xff]  ;;  %v5499_v47 = vpack.c.bf16 %v3226_v39, %v3225_v38  ;;  %v3246_v56 = vld [vmem:[%s7281_s20 + $0x3d8] sm:$0xff]  ;;  %v5503_v59 = vpack.c.bf16 %v3228_v50, %v3227_v49  ;;  %v5479_v61 = vpack.c.bf16 %v3200_v54, %v3199_v53  ;;  %v3275_v50 = vld [vmem:[%s7281_s20 + $0x4c0] sm:$0xff] }
 0xd6c   :  { %5462 = vmatprep.subr.bf16.mxu0 %v5461_v51  ;;  %v5501_v51 = vpack.c.bf16 %v3244_v44, %v3243_v43  ;;  %v5477_v52 = vpack.c.bf16 %v3216_v46, %v3215_v45  ;;  %v5505_v1 = vpack.c.bf16 %v3246_v56, %v3245_v55  ;;  %v5521_v38 = vpack.c.bf16 %v3270_v13, %v3269_v29  ;;  %v3255_v43 = vld [vmem:[%s7281_s20 + $0x420] sm:$0xff]  ;;  %v3256_v44 = vld [vmem:[%s7281_s20 + $0x428] sm:$0xff]  ;;  %v3258_v49 = vld [vmem:[%s7281_s20 + $0x438] sm:$0xff] }
 0xd6d   :  { %3424 = vmatprep.mubr.f32.mxu1 %v2908_v62  ;;  %v3229_v62 = vld [vmem:[%s7281_s20 + $0x350] sm:$0xff]  ;;  %v3121_v39 = vadd.f32 %v7001_v5, %v2754_v28  ;;  %v5527_v45 = vpack.c.bf16 %v3256_v44, %v3255_v43  ;;  %v3259_v53 = vld [vmem:[%s7281_s20 + $0x440] sm:$0xff]  ;;  %v3260_v54 = vld [vmem:[%s7281_s20 + $0x448] sm:$0xff] }
 0xd6e   :  { %3425 = vmatmul.mubr.f32.vlgmr.msra.gmra.mrb[44].mxu1 %v2906_v4  ;;  %v3202_v4 = vld [vmem:[%s7281_s20 + $0x278] sm:$0xff]  ;;  %v3273_v5 = vld [vmem:[%s7281_s20 + $0x4b0] sm:$0xff]  ;;  %v5535_v57 = vpack.c.bf16 %v3260_v54, %v3259_v53 }
 0xd6f   :  { %5488 = vmatpush3.bf16.msra.mxu1 %v5487_v63  ;;  %5464 = vmatpush3.bf16.msra.mxu0 %v5463_v0  ;;  %v3230_v63 = vld [vmem:[%s7281_s20 + $0x358] sm:$0xff]  ;;  %v2733_v0 = vsub.s32 4, %v6924_v23  ;;  %v5483_v11 = vpack.c.bf16 %v3202_v4, %v3201_v3  ;;  %v3271_v23 = vld [vmem:[%s7281_s20 + $0x4a0] sm:$0xff]  ;;  %v3277_v55 = vld [vmem:[%s7281_s20 + $0x4d0] sm:$0xff] }
 0xd70   :  { %5490 = vmatprep.subr.bf16.mxu1 %v5489_v6  ;;  %5466 = vmatprep.subr.bf16.mxu0 %v5465_v7  ;;  %v3247_v6 = vld [vmem:[%s7281_s20 + $0x3e0] sm:$0xff]  ;;  %v3248_v7 = vld [vmem:[%s7281_s20 + $0x3e8] sm:$0xff]  ;;  %v5507_v10 = vpack.c.bf16 %v3230_v63, %v3229_v62  ;;  %v3278_v56 = vld [vmem:[%s7281_s20 + $0x4d8] sm:$0xff] }
 0xd71   :  { %v7044_v30 = vpop.f32.mrb[28].mxu0  ;;  %v2734_v16 = vrot.slane %v6930_v25, %v2733_v0  ;;  %v3274_v25 = vld [vmem:[%s7281_s20 + $0x4b8] sm:$0xff]  ;;  %v5537_v58 = vpack.c.bf16 %v3278_v56, %v3277_v55  ;;  %v3279_v62 = vld [vmem:[%s7281_s20 + $0x4e0] sm:$0xff]  ;;  %v3280_v63 = vld [vmem:[%s7281_s20 + $0x4e8] sm:$0xff] }
 0xd72   :  { %v3049_v33 = vpop.f32.mrb[29].mxu0  ;;  %v3048_v46 = vadd.f32 %v7044_v30, %v2742_v41  ;;  %v3264_v3 = vld [vmem:[%s7281_s20 + $0x468] sm:$0xff]  ;;  %v3281_v4 = vld [vmem:[%s7281_s20 + $0x4f0] sm:$0xff] }
 0xd73   :  { %v3050_v34 = vadd.f32 %v3049_v33, %v2746_v17  ;;  %5492 = vmatpush3.bf16.msra.mxu1 %v5491_v18  ;;  %5468 = vmatpush3.bf16.msra.mxu0 %v5467_v20  ;;  %v5509_v17 = vpack.c.bf16 %v3248_v7, %v3247_v6  ;;  %v3232_v18 = vld [vmem:[%s7281_s20 + $0x368] sm:$0xff]  ;;  %v5517_v20 = vpack.c.bf16 %v3268_v9, %v3267_v8  ;;  %v3282_v6 = vld [vmem:[%s7281_s20 + $0x4f8] sm:$0xff]  ;;  %v3265_v9 = vld [vmem:[%s7281_s20 + $0x470] sm:$0xff] }
 0xd74   :  { %5494 = vmatprep.subr.bf16.mxu1 %v5493_v21  ;;  %5470 = vmatprep.subr.bf16.mxu0 %v5469_v27  ;;  %v3249_v21 = vld [vmem:[%s7281_s20 + $0x3f0] sm:$0xff]  ;;  %v3250_v27 = vld [vmem:[%s7281_s20 + $0x3f8] sm:$0xff]  ;;  %v5511_v31 = vpack.c.bf16 %v3232_v18, %v3231_v12  ;;  %v2977_v33 = vadd.f32 %v6944_v15, %v2734_v16  ;;  %v3272_v15 = vld [vmem:[%s7281_s20 + $0x4a8] sm:$0xff]  ;;  %v5545_v8 = vpack.c.bf16 %v3282_v6, %v3281_v4 }
 0xd75   :  { %3564 = vmatprep.mubr.f32.mxu1 %v3050_v34  ;;  %v5513_v36 = vpack.c.bf16 %v3250_v27, %v3249_v21  ;;  %v3234_v34 = vld [vmem:[%s7281_s20 + $0x378] sm:$0xff]  ;;  %v5525_v42 = vpack.c.bf16 %v3272_v15, %v3271_v23  ;;  %v3838_v18 = vld [vmem:[%s7282_s21] ss:$0 sm:$0xff] }
 0xd77   :  { %5496 = vmatpush3.bf16.msra.mxu1 %v5495_v35  ;;  %5472 = vmatpush3.bf16.msra.mxu0 %v5471_v37  ;;  %v3253_v35 = vld [vmem:[%s7281_s20 + $0x410] sm:$0xff]  ;;  %v3254_v37 = vld [vmem:[%s7281_s20 + $0x418] sm:$0xff] }
 0xd78   :  { %5498 = vmatprep.subr.bf16.mxu1 %v5497_v40  ;;  %5474 = vmatprep.subr.bf16.mxu0 %v5473_v22  ;;  %v5515_v40 = vpack.c.bf16 %v3234_v34, %v3233_v19  ;;  %v5523_v22 = vpack.c.bf16 %v3254_v37, %v3253_v35 }
 0xd7b   :  { %5500 = vmatpush3.bf16.msra.mxu1 %v5499_v47  ;;  %5476 = vmatpush3.bf16.msra.mxu0 %v5475_v48  ;;  %v5529_v47 = vpack.c.bf16 %v3274_v25, %v3273_v5  ;;  %v3257_v48 = vld [vmem:[%s7281_s20 + $0x430] sm:$0xff] }
 0xd7c   :  { %5502 = vmatprep.subr.bf16.mxu1 %v5501_v51  ;;  %5478 = vmatprep.subr.bf16.mxu0 %v5477_v52  ;;  %v3276_v51 = vld [vmem:[%s7281_s20 + $0x4c8] sm:$0xff]  ;;  %v5531_v30 = vpack.c.bf16 %v3258_v49, %v3257_v48 }
 0xd7d   :  { %v5533_v52 = vpack.c.bf16 %v3276_v51, %v3275_v50 }
 0xd7f   :  { %5504 = vmatpush3.bf16.msra.mxu1 %v5503_v59  ;;  %5480 = vmatpush3.bf16.msra.mxu0 %v5479_v61  ;;  %v3261_v59 = vld [vmem:[%s7281_s20 + $0x450] sm:$0xff]  ;;  %v3262_v61 = vld [vmem:[%s7281_s20 + $0x458] sm:$0xff] }
 0xd80   :  { %5506 = vmatprep.subr.bf16.mxu1 %v5505_v1  ;;  %5482 = vmatprep.subr.bf16.mxu0 %v5481_v2  ;;  %v5539_v0 = vpack.c.bf16 %v3262_v61, %v3261_v59  ;;  %v5541_v1 = vpack.c.bf16 %v3280_v63, %v3279_v62  ;;  %v3263_v2 = vld [vmem:[%s7281_s20 + $0x460] sm:$0xff] }
 0xd81   :  { %v5543_v7 = vpack.c.bf16 %v3264_v3, %v3263_v2 }
 0xd83   :  { %5508 = vmatpush3.bf16.msra.mxu1 %v5507_v10  ;;  %5484 = vmatpush3.bf16.msra.mxu0 %v5483_v11  ;;  %v3266_v10 = vld [vmem:[%s7281_s20 + $0x478] sm:$0xff]  ;;  %s5600_s20 = smov [#allocation2]  }
 0xd84   :  { %5510 = vmatprep.subr.bf16.mxu1 %v5509_v17  ;;  %5518 = vmatprep.subr.bf16.mxu0 %v5517_v20  ;;  %v5547_v11 = vpack.c.bf16 %v3266_v10, %v3265_v9  ;;  %s3648_s6 = sshll.u32 %s5600_s20, 4  ;;  %s3649_s6 = int_to_ptr.vmem [resolvable:$true] %s3648_s6 }
 0xd85   :  { %s5573_s21 = scalar_lea.vmem %s3649_s6, 32  ;;  %p5578_p1 = scmp.lt.s32.totalorder %s3649_s6, %s3649_s6 }
 0xd86   :  { %3495 = vmatmul.mubr.f32.vlgmr.msra.gmra.mrb[32].mxu0 %v2977_v33  ;;  %p5574_p0 = scmp.ne.s32.totalorder %s3649_s6, %s5573_s21  ;;  %p5579_p2 = scmp.lt.s32.totalorder %s5573_s21, %s5573_s21 }
 0xd87   :  { %5512 = vmatpush3.bf16.msra.mxu1 %v5511_v31  ;;  %5520 = vmatpush3.bf16.msra.mxu0 %v5519_v32 }
 0xd88   :  { %3634 = vmatprep.mubr.f32.mxu0 %v3121_v39  ;;  %5514 = vmatprep.subr.bf16.mxu1 %v5513_v36  ;;  %p5580_p3 = por %p5579_p2, %p5578_p1 }
 0xd89   :  { %5522 = vmatprep.subr.bf16.mxu0 %v5521_v38 }
 0xd8a   :  { %p5581_p4 = pnand %p5580_p3, %p5574_p0 }
 0xd8b   :  { %5516 = vmatpush3.bf16.msra.mxu1 %v5515_v40  ;;  %5524 = vmatpush3.bf16.msra.mxu0 %v5523_v22 }
 0xd8c   :  { %5526 = vmatprep.subr.bf16.mxu0 %v5525_v42 }
 0xd8e   :  { %3565 = vmatmul.mubr.f32.vlgmr.msra.gmra.mrb[46].mxu1 %v3048_v46 }
 0xd8f   :  { %5528 = vmatpush3.bf16.msra.mxu0 %v5527_v45 }
 0xd90   :  { %5530 = vmatprep.subr.bf16.mxu0 %v5529_v47 }
 0xd93   :  { %5532 = vmatpush3.bf16.msra.mxu0 %v5531_v30 }
 0xd94   :  { %5534 = vmatprep.subr.bf16.mxu0 %v5533_v52 }
 0xd97   :  { %5536 = vmatpush3.bf16.msra.mxu0 %v5535_v57 }
 0xd98   :  { %5538 = vmatprep.subr.bf16.mxu0 %v5537_v58 }
 0xd9b   :  { %5540 = vmatpush3.bf16.msra.mxu0 %v5539_v0 }
 0xd9c   :  { %5542 = vmatprep.subr.bf16.mxu0 %v5541_v1 }
 0xd9f   :  { %5544 = vmatpush3.bf16.msra.mxu0 %v5543_v7 }
 0xda0   :  { %5546 = vmatprep.subr.bf16.mxu0 %v5545_v8 }
 0xda3   :  { %5548 = vmatpush3.bf16.msra.mxu0 %v5547_v11 }
 0xda6   :  { %3635 = vmatmul.mubr.f32.vlgmr.msra.gmra.mrb[34].mxu0 %v6999_v60 }
 0xe39   :  { %v4179_v12 = vpop.f32.mrb[30].mxu0 }
 0xe3a   :  { %v4180_v16 = vpop.f32.mrb[31].mxu0 }
 0xe3b   :  { %v4181_v17 = vadd.f32 %v4180_v16, %v4179_v12 }
 0xe3d   :  { %v3357_v14 = vadd.f32 %v4181_v17, %v3838_v18 }
 0xe41   :  { %v4214_v20 = vpop.f32.mrb[44].mxu1 }
 0xe42   :  { %v4215_v26 = vpop.f32.mrb[45].mxu1 }
 0xe43   :  { %v4216_v21 = vadd.f32 %v4215_v26, %v4214_v20 }
 0xe45   :  { %v3427_v27 = vadd.f32 %v4216_v21, %v3357_v14 }
 0xe59   :  { %v4249_v28 = vpop.f32.mrb[32].mxu0 }
 0xe5a   :  { %v4250_v29 = vpop.f32.mrb[33].mxu0 }
 0xe5b   :  { %v4251_v13 = vadd.f32 %v4250_v29, %v4249_v28 }
 0xe5d   :  { %v3497_v31 = vadd.f32 %v4251_v13, %v3427_v27 }
 0xe61   :  { %v4284_v32 = vpop.f32.mrb[46].mxu1 }
 0xe62   :  { %v4285_v19 = vpop.f32.mrb[47].mxu1 }
 0xe63   :  { %v4286_v33 = vadd.f32 %v4285_v19, %v4284_v32 }
 0xe65   :  { %v3567_v60 = vadd.f32 %v4286_v33, %v3497_v31 }
 0xe79   :  { %v4319_v24 = vpop.f32.mrb[34].mxu0 }
 0xe7a   :  { %v4320_v36 = vpop.f32.mrb[35].mxu0 }
 0xe7b   :  { %v4321_v34 = vadd.f32 %v4320_v36, %v4319_v24 }
 0xe7d   :  { %v3637_v35 = vadd.f32 %v4321_v34, %v3567_v60 }
 0xe7f   :  { %3641 = vst.msk [vmem:[#allocation2] sm:$0x3] %vm3640_vm6, %v3637_v35 }
 0xe80   :  { %5584 = shalt.err (!%p5581_p4)
}
 0xe81   :  { %s5585_s7 = scalar_lea.hbm %s7283_s22, 32 }
 0xe82   :  { %p5586_p5 = scmp.ne.s32.totalorder %s7283_s22, %s5585_s7  ;;  %p5589_p6 = scmp.lt.u32.totalorder %s5585_s7, %s7283_s22 }
 0xe84   :  { %p5591_p7 = pnand %p5589_p6, %p5586_p5 }
 0xe86   :  { %5594 = shalt.err (!%p5591_p7)
}
 0xe87   :  { %3651 = dma.vmem_to_hbm [thread:$0]  %s3649_s6, 32, %s7283_s22, [#allocation3]  }
 0xe88   :  { %5595 = dma.done.wait [#allocation3], 32  }
 0xe89   :  { %5596 = vsyncadd [#allocation3], 4294967264 }
 0xe8a   :  { %3655 = vsyncpa [#allocation3], 1 }

</bundles_post_ra>
